<compile_context>
chip_gen: v5e
topology: v5e:2x2
jax: 0.10.0
libtpu: 0.0.40
codegen_flags: <defaults>
</compile_context>

<pallas_src>
import functools

import numpy as np
import jax
import jax.numpy as jnp
from jax.experimental import pallas as pl
from jax.experimental.pallas import tpu as pltpu

# ----------------------------- small DenseNet config -----------------------------
IN_CHANNELS = 3
INIT_FEATURES = 8
GROWTH = 8
BN_SIZE = 2
BLOCK_CONFIG = (2, 2)
BN_EPS = 1e-5
CONST_LANES = 128          # each packed affine constant padded to one 128-lane row


# ----------------------- constant spatial-structure matrices ----------------------
# Rows are flattened NHWC order: r = (n*H + h)*W + w.

def _maxpool3x3s2p1_gathers(N, H, W):
    """(9, M_out, M_in) 0/1 gather matrices: pooled = max_k (P[k] @ x)."""
    Ho, Wo = (H + 2 - 3) // 2 + 1, (W + 2 - 3) // 2 + 1
    P = np.zeros((9, N * Ho * Wo, N * H * W), np.float32)
    for n in range(N):
        for ho in range(Ho):
            for wo in range(Wo):
                r = (n * Ho + ho) * Wo + wo
                for di in range(3):
                    for dj in range(3):
                        hi, wi = 2 * ho - 1 + di, 2 * wo - 1 + dj
                        if 0 <= hi < H and 0 <= wi < W:
                            P[di * 3 + dj, r, (n * H + hi) * W + wi] = 1.0
    return P, Ho, Wo


def _conv3x3s1p1_shifts(N, H, W):
    """(9, M, M) 0/1 shift matrices: conv = sum_k S[k] @ (x @ W[k])."""
    M = N * H * W
    S = np.zeros((9, M, M), np.float32)
    for n in range(N):
        for h in range(H):
            for w in range(W):
                r = (n * H + h) * W + w
                for di in range(3):
                    for dj in range(3):
                        hi, wi = h + di - 1, w + dj - 1
                        if 0 <= hi < H and 0 <= wi < W:
                            S[di * 3 + dj, r, (n * H + hi) * W + wi] = 1.0
    return S


def _avgpool2x2s2_matrix(N, H, W):
    """(M_out, M_in) averaging matrix: pooled = A @ x."""
    Ho, Wo = H // 2, W // 2
    A = np.zeros((N * Ho * Wo, N * H * W), np.float32)
    for n in range(N):
        for ho in range(Ho):
            for wo in range(Wo):
                r = (n * Ho + ho) * Wo + wo
                for di in range(2):
                    for dj in range(2):
                        A[r, (n * H + 2 * ho + di) * W + 2 * wo + dj] = 0.25
    return A, Ho, Wo


# ---------------------------------- glue helpers ----------------------------------
def _bn_scale_bias(bn):
    s = bn["gamma"] / jnp.sqrt(bn["var"] + BN_EPS)
    b = bn["beta"] - bn["mean"] * s
    return s, b


def _im2col(x_nhwc, kh, kw, stride, pad):
    """Host/XLA-side patch extraction for the strided stem conv (tiny: ~75 KB)."""
    N, H, W, C = x_nhwc.shape
    xp = jnp.pad(x_nhwc, ((0, 0), (pad, pad), (pad, pad), (0, 0)))
    Ho = (H + 2 * pad - kh) // stride + 1
    Wo = (W + 2 * pad - kw) // stride + 1
    patches = []
    for i in range(kh):
        for j in range(kw):
            patches.append(xp[:, i:i + stride * Ho:stride, j:j + stride * Wo:stride, :])
    cols = jnp.concatenate(patches, axis=-1)            # (N, Ho, Wo, kh*kw*C)
    return cols.reshape(N * Ho * Wo, kh * kw * C), (N, Ho, Wo)


def _dotf32(a, b):
    # Default MXU precision (bf16 passes, f32 accumulation).  Pass
    # precision=lax.Precision.HIGHEST for bit-level f32 parity with PyTorch.
    return jnp.dot(a, b, preferred_element_type=jnp.float32)


# ------------------------------- the fused megakernel ------------------------------
def _backbone_kernel(plan, *refs):
    """Whole DenseNet feature extractor on VMEM-resident 2-D (rows x channels) data.

    refs = (inputs..., out_ref, per-block feature scratch refs...).
    `plan` holds only static Python ints (channel counts, const-row indices).
    """
    n_in = plan["n_inputs"]
    in_refs = refs[:n_in]
    out_ref = refs[n_in]
    feat_refs = refs[n_in + 1:]                         # one VMEM accumulator per block

    it = iter(in_refs)
    nxt = lambda: next(it)                              # noqa: E731
    cols_ref, w0_ref, pmax_ref, const_ref = nxt(), nxt(), nxt(), nxt()

    def crow(idx, c):                                   # (1, c) affine constant
        return const_ref[idx:idx + 1, 0:c]

    # ---- stem: conv0 (im2col matmul, norm0 folded into w0/b0) + ReLU ----
    y = jnp.maximum(_dotf32(cols_ref[...], w0_ref[...])
                    + crow(plan["b0"], INIT_FEATURES), 0.0)          # (M0, 8)

    # ---- maxpool 3x3/s2/p1: ONE stacked 0/1 gather matmul + balanced tree max.
    # Zero gather rows (padding taps) are safe because y is post-ReLU (>= 0)
    # and every window contains at least one valid element.
    M1 = plan["M"][0]
    g = _dotf32(pmax_ref[...], y)                                    # (9*M1, 8)
    parts = [g[k * M1:(k + 1) * M1, :] for k in range(9)]
    while len(parts) > 1:
        merged = [jnp.maximum(parts[i], parts[i + 1])
                  for i in range(0, len(parts) - 1, 2)]
        if len(parts) % 2:
            merged.append(parts[-1])
        parts = merged
    feat_refs[0][:, 0:INIT_FEATURES] = parts[0]                      # (M1, 8)

    # ---- dense blocks (+ transition).  Features live in a VMEM scratch; new
    # channels are appended with static lane-slice stores (no concat matmuls).
    cm = BN_SIZE * GROWTH
    for bi, blk in enumerate(plan["blocks"]):
        s_ref = nxt()                                    # (9, M, M) 3x3 shift matrices
        fref = feat_refs[bi]
        for ly in blk["layers"]:
            c_in = ly["c_in"]
            w1_ref = nxt()
            w2_ref = nxt()
            h = jnp.maximum(fref[:, 0:c_in] * crow(ly["s1"], c_in)
                            + crow(ly["b1"], c_in), 0.0)             # BN1 + ReLU
            h = _dotf32(h, w1_ref[...])                              # 1x1 bottleneck
            h = jnp.maximum(h * crow(ly["s2"], cm) + crow(ly["b2"], cm), 0.0)
            hw = _dotf32(h, w2_ref[...])                             # all 9 taps at once
            new = _dotf32(s_ref[0], hw[:, 0:GROWTH])                 # 3x3 conv, pad=1
            for k in range(1, 9):
                new = new + _dotf32(s_ref[k], hw[:, k * GROWTH:(k + 1) * GROWTH])
            fref[:, c_in:c_in + GROWTH] = new                        # channel "concat"
        if "trans" in blk:                                           # transition layer
            tr = blk["trans"]
            c_in = tr["c_in"]
            wt_ref = nxt()
            apool_ref = nxt()
            h = jnp.maximum(fref[:, 0:c_in] * crow(tr["s"], c_in)
                            + crow(tr["b"], c_in), 0.0)              # BN + ReLU
            h = _dotf32(h, wt_ref[...])                              # 1x1 conv
            feat_refs[bi + 1][:, 0:c_in // 2] = _dotf32(apool_ref[...], h)  # avg pool

    # ------------------------------------ norm5 ------------------------------------
    c_f = plan["c_final"]
    out_ref[...] = (feat_refs[-1][:, 0:c_f] * crow(plan["s5"], c_f)
                    + crow(plan["b5"], c_f))             # features end with norm5


# ----------------------------------- parameters -----------------------------------
def _bn_params(c):
    return dict(gamma=jnp.ones((c,), jnp.float32),
                beta=jnp.zeros((c,), jnp.float32),
                mean=jnp.zeros((c,), jnp.float32),
                var=jnp.ones((c,), jnp.float32))


def init_params(key):
    keys = iter(jax.random.split(key, 64))

    def conv_w(kh, kw, cin, cout):
        return 0.1 * jax.random.normal(next(keys), (kh, kw, cin, cout), jnp.float32)

    params = {
        "conv0": conv_w(7, 7, IN_CHANNELS, INIT_FEATURES),
        "norm0": _bn_params(INIT_FEATURES),
        "blocks": [],
        "transitions": [],
    }
    c = INIT_FEATURES
    for bi, n_layers in enumerate(BLOCK_CONFIG):
        layers = []
        for _ in range(n_layers):
            layers.append(dict(
                norm1=_bn_params(c),
                conv1=conv_w(1, 1, c, BN_SIZE * GROWTH),
                norm2=_bn_params(BN_SIZE * GROWTH),
                conv2=conv_w(3, 3, BN_SIZE * GROWTH, GROWTH),
            ))
            c += GROWTH
        params["blocks"].append(layers)
        if bi != len(BLOCK_CONFIG) - 1:
            params["transitions"].append(dict(
                norm=_bn_params(c),
                conv=conv_w(1, 1, c, c // 2),
            ))
            c //= 2
    params["norm5"] = _bn_params(c)
    return params


# ------------------------------------ forward ------------------------------------
def densenet_backbone_forward(params, x_nchw):
    x = jnp.transpose(x_nchw, (0, 2, 3, 1)).astype(jnp.float32)     # NCHW -> NHWC
    N, H, W, _ = x.shape

    # Stem im2col (tiny, built by XLA) + fold norm0 into conv0 weights/bias.
    cols0, (_, H0, W0) = _im2col(x, 7, 7, stride=2, pad=3)
    s0, b0 = _bn_scale_bias(params["norm0"])
    w0f = (params["conv0"] * s0).reshape(7 * 7 * IN_CHANNELS, INIT_FEATURES)

    pmax9, H1, W1 = _maxpool3x3s2p1_gathers(N, H0, W0)
    M1 = N * H1 * W1

    # Packed affine constants: one (n_rows, 128) f32 operand, static-sliced in-kernel.
    const_rows = []

    def cidx(v):
        const_rows.append(jnp.pad(v.astype(jnp.float32),
                                  (0, CONST_LANES - v.shape[0])))
        return len(const_rows) - 1

    # 0/1 (and 0.25) structure matrices are exact in bf16 -> half the DMA bytes.
    inputs = [cols0, w0f,
              jnp.asarray(pmax9.reshape(9 * M1, -1), jnp.bfloat16),
              None]                                      # slot 3: packed constants
    plan = {"b0": cidx(b0), "M": [], "blocks": []}
    feat_scratch_shapes = []

    c = INIT_FEATURES
    Hc, Wc = H1, W1
    for bi, n_layers in enumerate(BLOCK_CONFIG):
        M_blk = N * Hc * Wc
        plan["M"].append(M_blk)
        inputs.append(jnp.asarray(_conv3x3s1p1_shifts(N, Hc, Wc), jnp.bfloat16))
        blk = {"layers": []}
        for li in range(n_layers):
            lp = params["blocks"][bi][li]
            s1, b1 = _bn_scale_bias(lp["norm1"])
            s2, b2 = _bn_scale_bias(lp["norm2"])
            w1 = lp["conv1"].reshape(c, BN_SIZE * GROWTH)
            # Fold the 9 taps into output lanes: hw = h @ w2f; tap k = hw[:, 8k:8k+8].
            w2f = jnp.transpose(lp["conv2"].reshape(9, BN_SIZE * GROWTH, GROWTH),
                                (1, 0, 2)).reshape(BN_SIZE * GROWTH, 9 * GROWTH)
            blk["layers"].append(dict(c_in=c, s1=cidx(s1), b1=cidx(b1),
                                      s2=cidx(s2), b2=cidx(b2)))
            inputs += [w1, w2f]
            c += GROWTH
        feat_scratch_shapes.append((M_blk, c))           # channels at end of block
        if bi != len(BLOCK_CONFIG) - 1:
            tp = params["transitions"][bi]
            st, bt = _bn_scale_bias(tp["norm"])
            wt = tp["conv"].reshape(c, c // 2)
            apool, Ho, Wo = _avgpool2x2s2_matrix(N, Hc, Wc)
            blk["trans"] = dict(c_in=c, s=cidx(st), b=cidx(bt))
            inputs += [wt, jnp.asarray(apool, jnp.bfloat16)]
            c //= 2
            Hc, Wc = Ho, Wo
        plan["blocks"].append(blk)

    s5, b5 = _bn_scale_bias(params["norm5"])
    plan["s5"] = cidx(s5)
    plan["b5"] = cidx(b5)
    plan["c_final"] = c
    plan["n_inputs"] = len(inputs)
    inputs[3] = jnp.stack(const_rows)                    # (n_const, 128) f32

    M_out = N * Hc * Wc
    vmem = pltpu.MemorySpace.VMEM
    out2d = pl.pallas_call(
        functools.partial(_backbone_kernel, plan),
        out_shape=jax.ShapeDtypeStruct((M_out, c), jnp.float32),
        in_specs=[pl.BlockSpec(memory_space=vmem) for _ in inputs],
        out_specs=pl.BlockSpec(memory_space=vmem),
        scratch_shapes=[pltpu.VMEM(shp, jnp.float32) for shp in feat_scratch_shapes],
    )(*inputs)

    out = out2d.reshape(N, Hc, Wc, c)
    return jnp.transpose(out, (0, 3, 1, 2))              # NHWC -> NCHW


# -------------------------------------- main --------------------------------------
if __name__ == "__main__":
    key = jax.random.PRNGKey(0)
    pkey, xkey = jax.random.split(key)
    params = init_params(pkey)
    x = jax.random.normal(xkey, (2, IN_CHANNELS, 16, 16), jnp.float32)

    fwd = jax.jit(lambda inp: densenet_backbone_forward(params, inp))
    out = fwd(x)
    jax.block_until_ready(out)

    assert out.shape == (2, 28, 2, 2), out.shape
    assert out.dtype == jnp.float32
    print("KERNEL_OK")
</pallas_src>

<mosaic_0001>
module attributes {stable_mosaic.version = 11 : i64} {
  func.func @_backbone_kernel(%arg0: memref<128x147xf32, #tpu.memory_space<vmem>>, %arg1: memref<147x8xf32, #tpu.memory_space<vmem>>, %arg2: memref<288x128xbf16, #tpu.memory_space<vmem>>, %arg3: memref<21x128xf32, #tpu.memory_space<vmem>>, %arg4: memref<9x32x32xbf16, #tpu.memory_space<vmem>>, %arg5: memref<8x16xf32, #tpu.memory_space<vmem>>, %arg6: memref<16x72xf32, #tpu.memory_space<vmem>>, %arg7: memref<16x16xf32, #tpu.memory_space<vmem>>, %arg8: memref<16x72xf32, #tpu.memory_space<vmem>>, %arg9: memref<24x12xf32, #tpu.memory_space<vmem>>, %arg10: memref<8x32xbf16, #tpu.memory_space<vmem>>, %arg11: memref<9x8x8xbf16, #tpu.memory_space<vmem>>, %arg12: memref<12x16xf32, #tpu.memory_space<vmem>>, %arg13: memref<16x72xf32, #tpu.memory_space<vmem>>, %arg14: memref<20x16xf32, #tpu.memory_space<vmem>>, %arg15: memref<16x72xf32, #tpu.memory_space<vmem>>, %arg16: memref<8x28xf32, #tpu.memory_space<vmem>>, %arg17: memref<32x24xf32, #tpu.memory_space<vmem>>, %arg18: memref<8x28xf32, #tpu.memory_space<vmem>>) attributes {dimension_semantics = [], scalar_prefetch = 0 : i64, scratch_operands = 2 : i64, tpu.core_type = #tpu.core_type<tc>} {
    %c0 = arith.constant 0 : index
    %c0_0 = arith.constant 0 : index
    %0 = vector.load %arg0[%c0, %c0_0] : memref<128x147xf32, #tpu.memory_space<vmem>>, vector<128x147xf32>
    %c0_1 = arith.constant 0 : index
    %c0_2 = arith.constant 0 : index
    %1 = vector.load %arg1[%c0_1, %c0_2] : memref<147x8xf32, #tpu.memory_space<vmem>>, vector<147x8xf32>
    %cst = arith.constant dense<0.000000e+00> : vector<128x8xf32>
    %2 = tpu.matmul %0, %1, %cst {dimension_numbers = #tpu.dot_dimension_numbers<[1], [0], [0], [1], [0, 0, 1, 1], [], []>} : vector<128x147xf32>, vector<147x8xf32>, vector<128x8xf32> -> vector<128x8xf32>
    %c0_3 = arith.constant 0 : index
    %c0_4 = arith.constant 0 : index
    %3 = vector.load %arg3[%c0_3, %c0_4] : memref<21x128xf32, #tpu.memory_space<vmem>>, vector<1x8xf32>
    %4 = vector.broadcast %3 : vector<1x8xf32> to vector<128x8xf32>
    %5 = arith.addf %2, %4 : vector<128x8xf32>
    %cst_5 = arith.constant 0.000000e+00 : f32
    %6 = vector.broadcast %cst_5 : f32 to vector<128x8xf32>
    %7 = arith.maximumf %5, %6 : vector<128x8xf32>
    %c0_6 = arith.constant 0 : index
    %c0_7 = arith.constant 0 : index
    %8 = vector.load %arg2[%c0_6, %c0_7] : memref<288x128xbf16, #tpu.memory_space<vmem>>, vector<288x128xbf16>
    %cst_8 = arith.constant dense<0.000000e+00> : vector<288x8xf32>
    %9 = tpu.matmul %8, %7, %cst_8 {dimension_numbers = #tpu.dot_dimension_numbers<[1], [0], [0], [1], [0, 0, 1, 1], [], []>} : vector<288x128xbf16>, vector<128x8xf32>, vector<288x8xf32> -> vector<288x8xf32>
    %10 = vector.extract_strided_slice %9 {offsets = [0, 0], sizes = [32, 8], strides = [1, 1]} : vector<288x8xf32> to vector<32x8xf32>
    %11 = vector.extract_strided_slice %9 {offsets = [32, 0], sizes = [32, 8], strides = [1, 1]} : vector<288x8xf32> to vector<32x8xf32>
    %12 = vector.extract_strided_slice %9 {offsets = [64, 0], sizes = [32, 8], strides = [1, 1]} : vector<288x8xf32> to vector<32x8xf32>
    %13 = vector.extract_strided_slice %9 {offsets = [96, 0], sizes = [32, 8], strides = [1, 1]} : vector<288x8xf32> to vector<32x8xf32>
    %14 = vector.extract_strided_slice %9 {offsets = [128, 0], sizes = [32, 8], strides = [1, 1]} : vector<288x8xf32> to vector<32x8xf32>
    %15 = vector.extract_strided_slice %9 {offsets = [160, 0], sizes = [32, 8], strides = [1, 1]} : vector<288x8xf32> to vector<32x8xf32>
    %16 = vector.extract_strided_slice %9 {offsets = [192, 0], sizes = [32, 8], strides = [1, 1]} : vector<288x8xf32> to vector<32x8xf32>
    %17 = vector.extract_strided_slice %9 {offsets = [224, 0], sizes = [32, 8], strides = [1, 1]} : vector<288x8xf32> to vector<32x8xf32>
    %18 = vector.extract_strided_slice %9 {offsets = [256, 0], sizes = [32, 8], strides = [1, 1]} : vector<288x8xf32> to vector<32x8xf32>
    %19 = arith.maximumf %10, %11 : vector<32x8xf32>
    %20 = arith.maximumf %12, %13 : vector<32x8xf32>
    %21 = arith.maximumf %14, %15 : vector<32x8xf32>
    %22 = arith.maximumf %16, %17 : vector<32x8xf32>
    %23 = arith.maximumf %19, %20 : vector<32x8xf32>
    %24 = arith.maximumf %21, %22 : vector<32x8xf32>
    %25 = arith.maximumf %23, %24 : vector<32x8xf32>
    %26 = arith.maximumf %25, %18 : vector<32x8xf32>
    %c0_9 = arith.constant 0 : index
    %c0_10 = arith.constant 0 : index
    %27 = vector.load %arg17[%c0_9, %c0_10] : memref<32x24xf32, #tpu.memory_space<vmem>>, vector<32x8xf32>
    tpu.vector_store %arg17[%c0_9, %c0_10], %26 {strides = array<i32>} : memref<32x24xf32, #tpu.memory_space<vmem>>, vector<32x8xf32>,
    %c0_11 = arith.constant 0 : index
    %c0_12 = arith.constant 0 : index
    %28 = vector.load %arg17[%c0_11, %c0_12] : memref<32x24xf32, #tpu.memory_space<vmem>>, vector<32x8xf32>
    %c1 = arith.constant 1 : index
    %c0_13 = arith.constant 0 : index
    %29 = vector.load %arg3[%c1, %c0_13] : memref<21x128xf32, #tpu.memory_space<vmem>>, vector<1x8xf32>
    %30 = vector.broadcast %29 : vector<1x8xf32> to vector<32x8xf32>
    %31 = arith.mulf %28, %30 : vector<32x8xf32>
    %c2 = arith.constant 2 : index
    %c0_14 = arith.constant 0 : index
    %32 = vector.load %arg3[%c2, %c0_14] : memref<21x128xf32, #tpu.memory_space<vmem>>, vector<1x8xf32>
    %33 = vector.broadcast %32 : vector<1x8xf32> to vector<32x8xf32>
    %34 = arith.addf %31, %33 : vector<32x8xf32>
    %cst_15 = arith.constant 0.000000e+00 : f32
    %35 = vector.broadcast %cst_15 : f32 to vector<32x8xf32>
    %36 = arith.maximumf %34, %35 : vector<32x8xf32>
    %c0_16 = arith.constant 0 : index
    %c0_17 = arith.constant 0 : index
    %37 = vector.load %arg5[%c0_16, %c0_17] : memref<8x16xf32, #tpu.memory_space<vmem>>, vector<8x16xf32>
    %cst_18 = arith.constant dense<0.000000e+00> : vector<32x16xf32>
    %38 = tpu.matmul %36, %37, %cst_18 {dimension_numbers = #tpu.dot_dimension_numbers<[1], [0], [0], [1], [0, 0, 1, 1], [], []>} : vector<32x8xf32>, vector<8x16xf32>, vector<32x16xf32> -> vector<32x16xf32>
    %c3 = arith.constant 3 : index
    %c0_19 = arith.constant 0 : index
    %39 = vector.load %arg3[%c3, %c0_19] : memref<21x128xf32, #tpu.memory_space<vmem>>, vector<1x16xf32>
    %40 = vector.broadcast %39 : vector<1x16xf32> to vector<32x16xf32>
    %41 = arith.mulf %38, %40 : vector<32x16xf32>
    %c4 = arith.constant 4 : index
    %c0_20 = arith.constant 0 : index
    %42 = vector.load %arg3[%c4, %c0_20] : memref<21x128xf32, #tpu.memory_space<vmem>>, vector<1x16xf32>
    %43 = vector.broadcast %42 : vector<1x16xf32> to vector<32x16xf32>
    %44 = arith.addf %41, %43 : vector<32x16xf32>
    %cst_21 = arith.constant 0.000000e+00 : f32
    %45 = vector.broadcast %cst_21 : f32 to vector<32x16xf32>
    %46 = arith.maximumf %44, %45 : vector<32x16xf32>
    %c0_22 = arith.constant 0 : index
    %c0_23 = arith.constant 0 : index
    %47 = vector.load %arg6[%c0_22, %c0_23] : memref<16x72xf32, #tpu.memory_space<vmem>>, vector<16x72xf32>
    %cst_24 = arith.constant dense<0.000000e+00> : vector<32x72xf32>
    %48 = tpu.matmul %46, %47, %cst_24 {dimension_numbers = #tpu.dot_dimension_numbers<[1], [0], [0], [1], [0, 0, 1, 1], [], []>} : vector<32x16xf32>, vector<16x72xf32>, vector<32x72xf32> -> vector<32x72xf32>
    %c0_25 = arith.constant 0 : index
    %c0_26 = arith.constant 0 : index
    %c0_27 = arith.constant 0 : index
    %49 = vector.load %arg4[%c0_25, %c0_26, %c0_27] : memref<9x32x32xbf16, #tpu.memory_space<vmem>>, vector<1x32x32xbf16>
    %50 = vector.shape_cast %49 : vector<1x32x32xbf16> to vector<32x32xbf16>
    %51 = vector.extract_strided_slice %48 {offsets = [0, 0], sizes = [32, 8], strides = [1, 1]} : vector<32x72xf32> to vector<32x8xf32>
    %cst_28 = arith.constant dense<0.000000e+00> : vector<32x8xf32>
    %52 = tpu.matmul %50, %51, %cst_28 {dimension_numbers = #tpu.dot_dimension_numbers<[1], [0], [0], [1], [0, 0, 1, 1], [], []>} : vector<32x32xbf16>, vector<32x8xf32>, vector<32x8xf32> -> vector<32x8xf32>
    %c1_29 = arith.constant 1 : index
    %c0_30 = arith.constant 0 : index
    %c0_31 = arith.constant 0 : index
    %53 = vector.load %arg4[%c1_29, %c0_30, %c0_31] : memref<9x32x32xbf16, #tpu.memory_space<vmem>>, vector<1x32x32xbf16>
    %54 = vector.shape_cast %53 : vector<1x32x32xbf16> to vector<32x32xbf16>
    %55 = vector.extract_strided_slice %48 {offsets = [0, 8], sizes = [32, 8], strides = [1, 1]} : vector<32x72xf32> to vector<32x8xf32>
    %cst_32 = arith.constant dense<0.000000e+00> : vector<32x8xf32>
    %56 = tpu.matmul %54, %55, %cst_32 {dimension_numbers = #tpu.dot_dimension_numbers<[1], [0], [0], [1], [0, 0, 1, 1], [], []>} : vector<32x32xbf16>, vector<32x8xf32>, vector<32x8xf32> -> vector<32x8xf32>
    %57 = arith.addf %52, %56 : vector<32x8xf32>
    %c2_33 = arith.constant 2 : index
    %c0_34 = arith.constant 0 : index
    %c0_35 = arith.constant 0 : index
    %58 = vector.load %arg4[%c2_33, %c0_34, %c0_35] : memref<9x32x32xbf16, #tpu.memory_space<vmem>>, vector<1x32x32xbf16>
    %59 = vector.shape_cast %58 : vector<1x32x32xbf16> to vector<32x32xbf16>
    %60 = vector.extract_strided_slice %48 {offsets = [0, 16], sizes = [32, 8], strides = [1, 1]} : vector<32x72xf32> to vector<32x8xf32>
    %cst_36 = arith.constant dense<0.000000e+00> : vector<32x8xf32>
    %61 = tpu.matmul %59, %60, %cst_36 {dimension_numbers = #tpu.dot_dimension_numbers<[1], [0], [0], [1], [0, 0, 1, 1], [], []>} : vector<32x32xbf16>, vector<32x8xf32>, vector<32x8xf32> -> vector<32x8xf32>
    %62 = arith.addf %57, %61 : vector<32x8xf32>
    %c3_37 = arith.constant 3 : index
    %c0_38 = arith.constant 0 : index
    %c0_39 = arith.constant 0 : index
    %63 = vector.load %arg4[%c3_37, %c0_38, %c0_39] : memref<9x32x32xbf16, #tpu.memory_space<vmem>>, vector<1x32x32xbf16>
    %64 = vector.shape_cast %63 : vector<1x32x32xbf16> to vector<32x32xbf16>
    %65 = vector.extract_strided_slice %48 {offsets = [0, 24], sizes = [32, 8], strides = [1, 1]} : vector<32x72xf32> to vector<32x8xf32>
    %cst_40 = arith.constant dense<0.000000e+00> : vector<32x8xf32>
    %66 = tpu.matmul %64, %65, %cst_40 {dimension_numbers = #tpu.dot_dimension_numbers<[1], [0], [0], [1], [0, 0, 1, 1], [], []>} : vector<32x32xbf16>, vector<32x8xf32>, vector<32x8xf32> -> vector<32x8xf32>
    %67 = arith.addf %62, %66 : vector<32x8xf32>
    %c4_41 = arith.constant 4 : index
    %c0_42 = arith.constant 0 : index
    %c0_43 = arith.constant 0 : index
    %68 = vector.load %arg4[%c4_41, %c0_42, %c0_43] : memref<9x32x32xbf16, #tpu.memory_space<vmem>>, vector<1x32x32xbf16>
    %69 = vector.shape_cast %68 : vector<1x32x32xbf16> to vector<32x32xbf16>
    %70 = vector.extract_strided_slice %48 {offsets = [0, 32], sizes = [32, 8], strides = [1, 1]} : vector<32x72xf32> to vector<32x8xf32>
    %cst_44 = arith.constant dense<0.000000e+00> : vector<32x8xf32>
    %71 = tpu.matmul %69, %70, %cst_44 {dimension_numbers = #tpu.dot_dimension_numbers<[1], [0], [0], [1], [0, 0, 1, 1], [], []>} : vector<32x32xbf16>, vector<32x8xf32>, vector<32x8xf32> -> vector<32x8xf32>
    %72 = arith.addf %67, %71 : vector<32x8xf32>
    %c5 = arith.constant 5 : index
    %c0_45 = arith.constant 0 : index
    %c0_46 = arith.constant 0 : index
    %73 = vector.load %arg4[%c5, %c0_45, %c0_46] : memref<9x32x32xbf16, #tpu.memory_space<vmem>>, vector<1x32x32xbf16>
    %74 = vector.shape_cast %73 : vector<1x32x32xbf16> to vector<32x32xbf16>
    %75 = vector.extract_strided_slice %48 {offsets = [0, 40], sizes = [32, 8], strides = [1, 1]} : vector<32x72xf32> to vector<32x8xf32>
    %cst_47 = arith.constant dense<0.000000e+00> : vector<32x8xf32>
    %76 = tpu.matmul %74, %75, %cst_47 {dimension_numbers = #tpu.dot_dimension_numbers<[1], [0], [0], [1], [0, 0, 1, 1], [], []>} : vector<32x32xbf16>, vector<32x8xf32>, vector<32x8xf32> -> vector<32x8xf32>
    %77 = arith.addf %72, %76 : vector<32x8xf32>
    %c6 = arith.constant 6 : index
    %c0_48 = arith.constant 0 : index
    %c0_49 = arith.constant 0 : index
    %78 = vector.load %arg4[%c6, %c0_48, %c0_49] : memref<9x32x32xbf16, #tpu.memory_space<vmem>>, vector<1x32x32xbf16>
    %79 = vector.shape_cast %78 : vector<1x32x32xbf16> to vector<32x32xbf16>
    %80 = vector.extract_strided_slice %48 {offsets = [0, 48], sizes = [32, 8], strides = [1, 1]} : vector<32x72xf32> to vector<32x8xf32>
    %cst_50 = arith.constant dense<0.000000e+00> : vector<32x8xf32>
    %81 = tpu.matmul %79, %80, %cst_50 {dimension_numbers = #tpu.dot_dimension_numbers<[1], [0], [0], [1], [0, 0, 1, 1], [], []>} : vector<32x32xbf16>, vector<32x8xf32>, vector<32x8xf32> -> vector<32x8xf32>
    %82 = arith.addf %77, %81 : vector<32x8xf32>
    %c7 = arith.constant 7 : index
    %c0_51 = arith.constant 0 : index
    %c0_52 = arith.constant 0 : index
    %83 = vector.load %arg4[%c7, %c0_51, %c0_52] : memref<9x32x32xbf16, #tpu.memory_space<vmem>>, vector<1x32x32xbf16>
    %84 = vector.shape_cast %83 : vector<1x32x32xbf16> to vector<32x32xbf16>
    %85 = vector.extract_strided_slice %48 {offsets = [0, 56], sizes = [32, 8], strides = [1, 1]} : vector<32x72xf32> to vector<32x8xf32>
    %cst_53 = arith.constant dense<0.000000e+00> : vector<32x8xf32>
    %86 = tpu.matmul %84, %85, %cst_53 {dimension_numbers = #tpu.dot_dimension_numbers<[1], [0], [0], [1], [0, 0, 1, 1], [], []>} : vector<32x32xbf16>, vector<32x8xf32>, vector<32x8xf32> -> vector<32x8xf32>
    %87 = arith.addf %82, %86 : vector<32x8xf32>
    %c8 = arith.constant 8 : index
    %c0_54 = arith.constant 0 : index
    %c0_55 = arith.constant 0 : index
    %88 = vector.load %arg4[%c8, %c0_54, %c0_55] : memref<9x32x32xbf16, #tpu.memory_space<vmem>>, vector<1x32x32xbf16>
    %89 = vector.shape_cast %88 : vector<1x32x32xbf16> to vector<32x32xbf16>
    %90 = vector.extract_strided_slice %48 {offsets = [0, 64], sizes = [32, 8], strides = [1, 1]} : vector<32x72xf32> to vector<32x8xf32>
    %cst_56 = arith.constant dense<0.000000e+00> : vector<32x8xf32>
    %91 = tpu.matmul %89, %90, %cst_56 {dimension_numbers = #tpu.dot_dimension_numbers<[1], [0], [0], [1], [0, 0, 1, 1], [], []>} : vector<32x32xbf16>, vector<32x8xf32>, vector<32x8xf32> -> vector<32x8xf32>
    %92 = arith.addf %87, %91 : vector<32x8xf32>
    %c0_57 = arith.constant 0 : index
    %c8_58 = arith.constant 8 : index
    %93 = vector.load %arg17[%c0_57, %c8_58] : memref<32x24xf32, #tpu.memory_space<vmem>>, vector<32x8xf32>
    tpu.vector_store %arg17[%c0_57, %c8_58], %92 {strides = array<i32>} : memref<32x24xf32, #tpu.memory_space<vmem>>, vector<32x8xf32>,
    %c0_59 = arith.constant 0 : index
    %c0_60 = arith.constant 0 : index
    %94 = vector.load %arg17[%c0_59, %c0_60] : memref<32x24xf32, #tpu.memory_space<vmem>>, vector<32x16xf32>
    %c5_61 = arith.constant 5 : index
    %c0_62 = arith.constant 0 : index
    %95 = vector.load %arg3[%c5_61, %c0_62] : memref<21x128xf32, #tpu.memory_space<vmem>>, vector<1x16xf32>
    %96 = vector.broadcast %95 : vector<1x16xf32> to vector<32x16xf32>
    %97 = arith.mulf %94, %96 : vector<32x16xf32>
    %c6_63 = arith.constant 6 : index
    %c0_64 = arith.constant 0 : index
    %98 = vector.load %arg3[%c6_63, %c0_64] : memref<21x128xf32, #tpu.memory_space<vmem>>, vector<1x16xf32>
    %99 = vector.broadcast %98 : vector<1x16xf32> to vector<32x16xf32>
    %100 = arith.addf %97, %99 : vector<32x16xf32>
    %cst_65 = arith.constant 0.000000e+00 : f32
    %101 = vector.broadcast %cst_65 : f32 to vector<32x16xf32>
    %102 = arith.maximumf %100, %101 : vector<32x16xf32>
    %c0_66 = arith.constant 0 : index
    %c0_67 = arith.constant 0 : index
    %103 = vector.load %arg7[%c0_66, %c0_67] : memref<16x16xf32, #tpu.memory_space<vmem>>, vector<16x16xf32>
    %cst_68 = arith.constant dense<0.000000e+00> : vector<32x16xf32>
    %104 = tpu.matmul %102, %103, %cst_68 {dimension_numbers = #tpu.dot_dimension_numbers<[1], [0], [0], [1], [0, 0, 1, 1], [], []>} : vector<32x16xf32>, vector<16x16xf32>, vector<32x16xf32> -> vector<32x16xf32>
    %c7_69 = arith.constant 7 : index
    %c0_70 = arith.constant 0 : index
    %105 = vector.load %arg3[%c7_69, %c0_70] : memref<21x128xf32, #tpu.memory_space<vmem>>, vector<1x16xf32>
    %106 = vector.broadcast %105 : vector<1x16xf32> to vector<32x16xf32>
    %107 = arith.mulf %104, %106 : vector<32x16xf32>
    %c8_71 = arith.constant 8 : index
    %c0_72 = arith.constant 0 : index
    %108 = vector.load %arg3[%c8_71, %c0_72] : memref<21x128xf32, #tpu.memory_space<vmem>>, vector<1x16xf32>
    %109 = vector.broadcast %108 : vector<1x16xf32> to vector<32x16xf32>
    %110 = arith.addf %107, %109 : vector<32x16xf32>
    %cst_73 = arith.constant 0.000000e+00 : f32
    %111 = vector.broadcast %cst_73 : f32 to vector<32x16xf32>
    %112 = arith.maximumf %110, %111 : vector<32x16xf32>
    %c0_74 = arith.constant 0 : index
    %c0_75 = arith.constant 0 : index
    %113 = vector.load %arg8[%c0_74, %c0_75] : memref<16x72xf32, #tpu.memory_space<vmem>>, vector<16x72xf32>
    %cst_76 = arith.constant dense<0.000000e+00> : vector<32x72xf32>
    %114 = tpu.matmul %112, %113, %cst_76 {dimension_numbers = #tpu.dot_dimension_numbers<[1], [0], [0], [1], [0, 0, 1, 1], [], []>} : vector<32x16xf32>, vector<16x72xf32>, vector<32x72xf32> -> vector<32x72xf32>
    %c0_77 = arith.constant 0 : index
    %c0_78 = arith.constant 0 : index
    %c0_79 = arith.constant 0 : index
    %115 = vector.load %arg4[%c0_77, %c0_78, %c0_79] : memref<9x32x32xbf16, #tpu.memory_space<vmem>>, vector<1x32x32xbf16>
    %116 = vector.shape_cast %115 : vector<1x32x32xbf16> to vector<32x32xbf16>
    %117 = vector.extract_strided_slice %114 {offsets = [0, 0], sizes = [32, 8], strides = [1, 1]} : vector<32x72xf32> to vector<32x8xf32>
    %cst_80 = arith.constant dense<0.000000e+00> : vector<32x8xf32>
    %118 = tpu.matmul %116, %117, %cst_80 {dimension_numbers = #tpu.dot_dimension_numbers<[1], [0], [0], [1], [0, 0, 1, 1], [], []>} : vector<32x32xbf16>, vector<32x8xf32>, vector<32x8xf32> -> vector<32x8xf32>
    %c1_81 = arith.constant 1 : index
    %c0_82 = arith.constant 0 : index
    %c0_83 = arith.constant 0 : index
    %119 = vector.load %arg4[%c1_81, %c0_82, %c0_83] : memref<9x32x32xbf16, #tpu.memory_space<vmem>>, vector<1x32x32xbf16>
    %120 = vector.shape_cast %119 : vector<1x32x32xbf16> to vector<32x32xbf16>
    %121 = vector.extract_strided_slice %114 {offsets = [0, 8], sizes = [32, 8], strides = [1, 1]} : vector<32x72xf32> to vector<32x8xf32>
    %cst_84 = arith.constant dense<0.000000e+00> : vector<32x8xf32>
    %122 = tpu.matmul %120, %121, %cst_84 {dimension_numbers = #tpu.dot_dimension_numbers<[1], [0], [0], [1], [0, 0, 1, 1], [], []>} : vector<32x32xbf16>, vector<32x8xf32>, vector<32x8xf32> -> vector<32x8xf32>
    %123 = arith.addf %118, %122 : vector<32x8xf32>
    %c2_85 = arith.constant 2 : index
    %c0_86 = arith.constant 0 : index
    %c0_87 = arith.constant 0 : index
    %124 = vector.load %arg4[%c2_85, %c0_86, %c0_87] : memref<9x32x32xbf16, #tpu.memory_space<vmem>>, vector<1x32x32xbf16>
    %125 = vector.shape_cast %124 : vector<1x32x32xbf16> to vector<32x32xbf16>
    %126 = vector.extract_strided_slice %114 {offsets = [0, 16], sizes = [32, 8], strides = [1, 1]} : vector<32x72xf32> to vector<32x8xf32>
    %cst_88 = arith.constant dense<0.000000e+00> : vector<32x8xf32>
    %127 = tpu.matmul %125, %126, %cst_88 {dimension_numbers = #tpu.dot_dimension_numbers<[1], [0], [0], [1], [0, 0, 1, 1], [], []>} : vector<32x32xbf16>, vector<32x8xf32>, vector<32x8xf32> -> vector<32x8xf32>
    %128 = arith.addf %123, %127 : vector<32x8xf32>
    %c3_89 = arith.constant 3 : index
    %c0_90 = arith.constant 0 : index
    %c0_91 = arith.constant 0 : index
    %129 = vector.load %arg4[%c3_89, %c0_90, %c0_91] : memref<9x32x32xbf16, #tpu.memory_space<vmem>>, vector<1x32x32xbf16>
    %130 = vector.shape_cast %129 : vector<1x32x32xbf16> to vector<32x32xbf16>
    %131 = vector.extract_strided_slice %114 {offsets = [0, 24], sizes = [32, 8], strides = [1, 1]} : vector<32x72xf32> to vector<32x8xf32>
    %cst_92 = arith.constant dense<0.000000e+00> : vector<32x8xf32>
    %132 = tpu.matmul %130, %131, %cst_92 {dimension_numbers = #tpu.dot_dimension_numbers<[1], [0], [0], [1], [0, 0, 1, 1], [], []>} : vector<32x32xbf16>, vector<32x8xf32>, vector<32x8xf32> -> vector<32x8xf32>
    %133 = arith.addf %128, %132 : vector<32x8xf32>
    %c4_93 = arith.constant 4 : index
    %c0_94 = arith.constant 0 : index
    %c0_95 = arith.constant 0 : index
    %134 = vector.load %arg4[%c4_93, %c0_94, %c0_95] : memref<9x32x32xbf16, #tpu.memory_space<vmem>>, vector<1x32x32xbf16>
    %135 = vector.shape_cast %134 : vector<1x32x32xbf16> to vector<32x32xbf16>
    %136 = vector.extract_strided_slice %114 {offsets = [0, 32], sizes = [32, 8], strides = [1, 1]} : vector<32x72xf32> to vector<32x8xf32>
    %cst_96 = arith.constant dense<0.000000e+00> : vector<32x8xf32>
    %137 = tpu.matmul %135, %136, %cst_96 {dimension_numbers = #tpu.dot_dimension_numbers<[1], [0], [0], [1], [0, 0, 1, 1], [], []>} : vector<32x32xbf16>, vector<32x8xf32>, vector<32x8xf32> -> vector<32x8xf32>
    %138 = arith.addf %133, %137 : vector<32x8xf32>
    %c5_97 = arith.constant 5 : index
    %c0_98 = arith.constant 0 : index
    %c0_99 = arith.constant 0 : index
    %139 = vector.load %arg4[%c5_97, %c0_98, %c0_99] : memref<9x32x32xbf16, #tpu.memory_space<vmem>>, vector<1x32x32xbf16>
    %140 = vector.shape_cast %139 : vector<1x32x32xbf16> to vector<32x32xbf16>
    %141 = vector.extract_strided_slice %114 {offsets = [0, 40], sizes = [32, 8], strides = [1, 1]} : vector<32x72xf32> to vector<32x8xf32>
    %cst_100 = arith.constant dense<0.000000e+00> : vector<32x8xf32>
    %142 = tpu.matmul %140, %141, %cst_100 {dimension_numbers = #tpu.dot_dimension_numbers<[1], [0], [0], [1], [0, 0, 1, 1], [], []>} : vector<32x32xbf16>, vector<32x8xf32>, vector<32x8xf32> -> vector<32x8xf32>
    %143 = arith.addf %138, %142 : vector<32x8xf32>
    %c6_101 = arith.constant 6 : index
    %c0_102 = arith.constant 0 : index
    %c0_103 = arith.constant 0 : index
    %144 = vector.load %arg4[%c6_101, %c0_102, %c0_103] : memref<9x32x32xbf16, #tpu.memory_space<vmem>>, vector<1x32x32xbf16>
    %145 = vector.shape_cast %144 : vector<1x32x32xbf16> to vector<32x32xbf16>
    %146 = vector.extract_strided_slice %114 {offsets = [0, 48], sizes = [32, 8], strides = [1, 1]} : vector<32x72xf32> to vector<32x8xf32>
    %cst_104 = arith.constant dense<0.000000e+00> : vector<32x8xf32>
    %147 = tpu.matmul %145, %146, %cst_104 {dimension_numbers = #tpu.dot_dimension_numbers<[1], [0], [0], [1], [0, 0, 1, 1], [], []>} : vector<32x32xbf16>, vector<32x8xf32>, vector<32x8xf32> -> vector<32x8xf32>
    %148 = arith.addf %143, %147 : vector<32x8xf32>
    %c7_105 = arith.constant 7 : index
    %c0_106 = arith.constant 0 : index
    %c0_107 = arith.constant 0 : index
    %149 = vector.load %arg4[%c7_105, %c0_106, %c0_107] : memref<9x32x32xbf16, #tpu.memory_space<vmem>>, vector<1x32x32xbf16>
    %150 = vector.shape_cast %149 : vector<1x32x32xbf16> to vector<32x32xbf16>
    %151 = vector.extract_strided_slice %114 {offsets = [0, 56], sizes = [32, 8], strides = [1, 1]} : vector<32x72xf32> to vector<32x8xf32>
    %cst_108 = arith.constant dense<0.000000e+00> : vector<32x8xf32>
    %152 = tpu.matmul %150, %151, %cst_108 {dimension_numbers = #tpu.dot_dimension_numbers<[1], [0], [0], [1], [0, 0, 1, 1], [], []>} : vector<32x32xbf16>, vector<32x8xf32>, vector<32x8xf32> -> vector<32x8xf32>
    %153 = arith.addf %148, %152 : vector<32x8xf32>
    %c8_109 = arith.constant 8 : index
    %c0_110 = arith.constant 0 : index
    %c0_111 = arith.constant 0 : index
    %154 = vector.load %arg4[%c8_109, %c0_110, %c0_111] : memref<9x32x32xbf16, #tpu.memory_space<vmem>>, vector<1x32x32xbf16>
    %155 = vector.shape_cast %154 : vector<1x32x32xbf16> to vector<32x32xbf16>
    %156 = vector.extract_strided_slice %114 {offsets = [0, 64], sizes = [32, 8], strides = [1, 1]} : vector<32x72xf32> to vector<32x8xf32>
    %cst_112 = arith.constant dense<0.000000e+00> : vector<32x8xf32>
    %157 = tpu.matmul %155, %156, %cst_112 {dimension_numbers = #tpu.dot_dimension_numbers<[1], [0], [0], [1], [0, 0, 1, 1], [], []>} : vector<32x32xbf16>, vector<32x8xf32>, vector<32x8xf32> -> vector<32x8xf32>
    %158 = arith.addf %153, %157 : vector<32x8xf32>
    %c0_113 = arith.constant 0 : index
    %c16 = arith.constant 16 : index
    %159 = vector.load %arg17[%c0_113, %c16] : memref<32x24xf32, #tpu.memory_space<vmem>>, vector<32x8xf32>
    tpu.vector_store %arg17[%c0_113, %c16], %158 {strides = array<i32>} : memref<32x24xf32, #tpu.memory_space<vmem>>, vector<32x8xf32>,
    %c0_114 = arith.constant 0 : index
    %c0_115 = arith.constant 0 : index
    %160 = vector.load %arg17[%c0_114, %c0_115] : memref<32x24xf32, #tpu.memory_space<vmem>>, vector<32x24xf32>
    %c9 = arith.constant 9 : index
    %c0_116 = arith.constant 0 : index
    %161 = vector.load %arg3[%c9, %c0_116] : memref<21x128xf32, #tpu.memory_space<vmem>>, vector<1x24xf32>
    %162 = vector.broadcast %161 : vector<1x24xf32> to vector<32x24xf32>
    %163 = arith.mulf %160, %162 : vector<32x24xf32>
    %c10 = arith.constant 10 : index
    %c0_117 = arith.constant 0 : index
    %164 = vector.load %arg3[%c10, %c0_117] : memref<21x128xf32, #tpu.memory_space<vmem>>, vector<1x24xf32>
    %165 = vector.broadcast %164 : vector<1x24xf32> to vector<32x24xf32>
    %166 = arith.addf %163, %165 : vector<32x24xf32>
    %cst_118 = arith.constant 0.000000e+00 : f32
    %167 = vector.broadcast %cst_118 : f32 to vector<32x24xf32>
    %168 = arith.maximumf %166, %167 : vector<32x24xf32>
    %c0_119 = arith.constant 0 : index
    %c0_120 = arith.constant 0 : index
    %169 = vector.load %arg9[%c0_119, %c0_120] : memref<24x12xf32, #tpu.memory_space<vmem>>, vector<24x12xf32>
    %cst_121 = arith.constant dense<0.000000e+00> : vector<32x12xf32>
    %170 = tpu.matmul %168, %169, %cst_121 {dimension_numbers = #tpu.dot_dimension_numbers<[1], [0], [0], [1], [0, 0, 1, 1], [], []>} : vector<32x24xf32>, vector<24x12xf32>, vector<32x12xf32> -> vector<32x12xf32>
    %c0_122 = arith.constant 0 : index
    %c0_123 = arith.constant 0 : index
    %171 = vector.load %arg10[%c0_122, %c0_123] : memref<8x32xbf16, #tpu.memory_space<vmem>>, vector<8x32xbf16>
    %cst_124 = arith.constant dense<0.000000e+00> : vector<8x12xf32>
    %172 = tpu.matmul %171, %170, %cst_124 {dimension_numbers = #tpu.dot_dimension_numbers<[1], [0], [0], [1], [0, 0, 1, 1], [], []>} : vector<8x32xbf16>, vector<32x12xf32>, vector<8x12xf32> -> vector<8x12xf32>
    %c0_125 = arith.constant 0 : index
    %c0_126 = arith.constant 0 : index
    %173 = vector.load %arg18[%c0_125, %c0_126] : memref<8x28xf32, #tpu.memory_space<vmem>>, vector<8x12xf32>
    tpu.vector_store %arg18[%c0_125, %c0_126], %172 {strides = array<i32>} : memref<8x28xf32, #tpu.memory_space<vmem>>, vector<8x12xf32>,
    %c0_127 = arith.constant 0 : index
    %c0_128 = arith.constant 0 : index
    %174 = vector.load %arg18[%c0_127, %c0_128] : memref<8x28xf32, #tpu.memory_space<vmem>>, vector<8x12xf32>
    %c11 = arith.constant 11 : index
    %c0_129 = arith.constant 0 : index
    %175 = vector.load %arg3[%c11, %c0_129] : memref<21x128xf32, #tpu.memory_space<vmem>>, vector<1x12xf32>
    %176 = vector.broadcast %175 : vector<1x12xf32> to vector<8x12xf32>
    %177 = arith.mulf %174, %176 : vector<8x12xf32>
    %c12 = arith.constant 12 : index
    %c0_130 = arith.constant 0 : index
    %178 = vector.load %arg3[%c12, %c0_130] : memref<21x128xf32, #tpu.memory_space<vmem>>, vector<1x12xf32>
    %179 = vector.broadcast %178 : vector<1x12xf32> to vector<8x12xf32>
    %180 = arith.addf %177, %179 : vector<8x12xf32>
    %cst_131 = arith.constant 0.000000e+00 : f32
    %181 = vector.broadcast %cst_131 : f32 to vector<8x12xf32>
    %182 = arith.maximumf %180, %181 : vector<8x12xf32>
    %c0_132 = arith.constant 0 : index
    %c0_133 = arith.constant 0 : index
    %183 = vector.load %arg12[%c0_132, %c0_133] : memref<12x16xf32, #tpu.memory_space<vmem>>, vector<12x16xf32>
    %cst_134 = arith.constant dense<0.000000e+00> : vector<8x16xf32>
    %184 = tpu.matmul %182, %183, %cst_134 {dimension_numbers = #tpu.dot_dimension_numbers<[1], [0], [0], [1], [0, 0, 1, 1], [], []>} : vector<8x12xf32>, vector<12x16xf32>, vector<8x16xf32> -> vector<8x16xf32>
    %c13 = arith.constant 13 : index
    %c0_135 = arith.constant 0 : index
    %185 = vector.load %arg3[%c13, %c0_135] : memref<21x128xf32, #tpu.memory_space<vmem>>, vector<1x16xf32>
    %186 = vector.broadcast %185 : vector<1x16xf32> to vector<8x16xf32>
    %187 = arith.mulf %184, %186 : vector<8x16xf32>
    %c14 = arith.constant 14 : index
    %c0_136 = arith.constant 0 : index
    %188 = vector.load %arg3[%c14, %c0_136] : memref<21x128xf32, #tpu.memory_space<vmem>>, vector<1x16xf32>
    %189 = vector.broadcast %188 : vector<1x16xf32> to vector<8x16xf32>
    %190 = arith.addf %187, %189 : vector<8x16xf32>
    %cst_137 = arith.constant 0.000000e+00 : f32
    %191 = vector.broadcast %cst_137 : f32 to vector<8x16xf32>
    %192 = arith.maximumf %190, %191 : vector<8x16xf32>
    %c0_138 = arith.constant 0 : index
    %c0_139 = arith.constant 0 : index
    %193 = vector.load %arg13[%c0_138, %c0_139] : memref<16x72xf32, #tpu.memory_space<vmem>>, vector<16x72xf32>
    %cst_140 = arith.constant dense<0.000000e+00> : vector<8x72xf32>
    %194 = tpu.matmul %192, %193, %cst_140 {dimension_numbers = #tpu.dot_dimension_numbers<[1], [0], [0], [1], [0, 0, 1, 1], [], []>} : vector<8x16xf32>, vector<16x72xf32>, vector<8x72xf32> -> vector<8x72xf32>
    %c0_141 = arith.constant 0 : index
    %c0_142 = arith.constant 0 : index
    %c0_143 = arith.constant 0 : index
    %195 = vector.load %arg11[%c0_141, %c0_142, %c0_143] : memref<9x8x8xbf16, #tpu.memory_space<vmem>>, vector<1x8x8xbf16>
    %196 = vector.shape_cast %195 : vector<1x8x8xbf16> to vector<8x8xbf16>
    %197 = vector.extract_strided_slice %194 {offsets = [0, 0], sizes = [8, 8], strides = [1, 1]} : vector<8x72xf32> to vector<8x8xf32>
    %cst_144 = arith.constant dense<0.000000e+00> : vector<8x8xf32>
    %198 = tpu.matmul %196, %197, %cst_144 {dimension_numbers = #tpu.dot_dimension_numbers<[1], [0], [0], [1], [0, 0, 1, 1], [], []>} : vector<8x8xbf16>, vector<8x8xf32>, vector<8x8xf32> -> vector<8x8xf32>
    %c1_145 = arith.constant 1 : index
    %c0_146 = arith.constant 0 : index
    %c0_147 = arith.constant 0 : index
    %199 = vector.load %arg11[%c1_145, %c0_146, %c0_147] : memref<9x8x8xbf16, #tpu.memory_space<vmem>>, vector<1x8x8xbf16>
    %200 = vector.shape_cast %199 : vector<1x8x8xbf16> to vector<8x8xbf16>
    %201 = vector.extract_strided_slice %194 {offsets = [0, 8], sizes = [8, 8], strides = [1, 1]} : vector<8x72xf32> to vector<8x8xf32>
    %cst_148 = arith.constant dense<0.000000e+00> : vector<8x8xf32>
    %202 = tpu.matmul %200, %201, %cst_148 {dimension_numbers = #tpu.dot_dimension_numbers<[1], [0], [0], [1], [0, 0, 1, 1], [], []>} : vector<8x8xbf16>, vector<8x8xf32>, vector<8x8xf32> -> vector<8x8xf32>
    %203 = arith.addf %198, %202 : vector<8x8xf32>
    %c2_149 = arith.constant 2 : index
    %c0_150 = arith.constant 0 : index
    %c0_151 = arith.constant 0 : index
    %204 = vector.load %arg11[%c2_149, %c0_150, %c0_151] : memref<9x8x8xbf16, #tpu.memory_space<vmem>>, vector<1x8x8xbf16>
    %205 = vector.shape_cast %204 : vector<1x8x8xbf16> to vector<8x8xbf16>
    %206 = vector.extract_strided_slice %194 {offsets = [0, 16], sizes = [8, 8], strides = [1, 1]} : vector<8x72xf32> to vector<8x8xf32>
    %cst_152 = arith.constant dense<0.000000e+00> : vector<8x8xf32>
    %207 = tpu.matmul %205, %206, %cst_152 {dimension_numbers = #tpu.dot_dimension_numbers<[1], [0], [0], [1], [0, 0, 1, 1], [], []>} : vector<8x8xbf16>, vector<8x8xf32>, vector<8x8xf32> -> vector<8x8xf32>
    %208 = arith.addf %203, %207 : vector<8x8xf32>
    %c3_153 = arith.constant 3 : index
    %c0_154 = arith.constant 0 : index
    %c0_155 = arith.constant 0 : index
    %209 = vector.load %arg11[%c3_153, %c0_154, %c0_155] : memref<9x8x8xbf16, #tpu.memory_space<vmem>>, vector<1x8x8xbf16>
    %210 = vector.shape_cast %209 : vector<1x8x8xbf16> to vector<8x8xbf16>
    %211 = vector.extract_strided_slice %194 {offsets = [0, 24], sizes = [8, 8], strides = [1, 1]} : vector<8x72xf32> to vector<8x8xf32>
    %cst_156 = arith.constant dense<0.000000e+00> : vector<8x8xf32>
    %212 = tpu.matmul %210, %211, %cst_156 {dimension_numbers = #tpu.dot_dimension_numbers<[1], [0], [0], [1], [0, 0, 1, 1], [], []>} : vector<8x8xbf16>, vector<8x8xf32>, vector<8x8xf32> -> vector<8x8xf32>
    %213 = arith.addf %208, %212 : vector<8x8xf32>
    %c4_157 = arith.constant 4 : index
    %c0_158 = arith.constant 0 : index
    %c0_159 = arith.constant 0 : index
    %214 = vector.load %arg11[%c4_157, %c0_158, %c0_159] : memref<9x8x8xbf16, #tpu.memory_space<vmem>>, vector<1x8x8xbf16>
    %215 = vector.shape_cast %214 : vector<1x8x8xbf16> to vector<8x8xbf16>
    %216 = vector.extract_strided_slice %194 {offsets = [0, 32], sizes = [8, 8], strides = [1, 1]} : vector<8x72xf32> to vector<8x8xf32>
    %cst_160 = arith.constant dense<0.000000e+00> : vector<8x8xf32>
    %217 = tpu.matmul %215, %216, %cst_160 {dimension_numbers = #tpu.dot_dimension_numbers<[1], [0], [0], [1], [0, 0, 1, 1], [], []>} : vector<8x8xbf16>, vector<8x8xf32>, vector<8x8xf32> -> vector<8x8xf32>
    %218 = arith.addf %213, %217 : vector<8x8xf32>
    %c5_161 = arith.constant 5 : index
    %c0_162 = arith.constant 0 : index
    %c0_163 = arith.constant 0 : index
    %219 = vector.load %arg11[%c5_161, %c0_162, %c0_163] : memref<9x8x8xbf16, #tpu.memory_space<vmem>>, vector<1x8x8xbf16>
    %220 = vector.shape_cast %219 : vector<1x8x8xbf16> to vector<8x8xbf16>
    %221 = vector.extract_strided_slice %194 {offsets = [0, 40], sizes = [8, 8], strides = [1, 1]} : vector<8x72xf32> to vector<8x8xf32>
    %cst_164 = arith.constant dense<0.000000e+00> : vector<8x8xf32>
    %222 = tpu.matmul %220, %221, %cst_164 {dimension_numbers = #tpu.dot_dimension_numbers<[1], [0], [0], [1], [0, 0, 1, 1], [], []>} : vector<8x8xbf16>, vector<8x8xf32>, vector<8x8xf32> -> vector<8x8xf32>
    %223 = arith.addf %218, %222 : vector<8x8xf32>
    %c6_165 = arith.constant 6 : index
    %c0_166 = arith.constant 0 : index
    %c0_167 = arith.constant 0 : index
    %224 = vector.load %arg11[%c6_165, %c0_166, %c0_167] : memref<9x8x8xbf16, #tpu.memory_space<vmem>>, vector<1x8x8xbf16>
    %225 = vector.shape_cast %224 : vector<1x8x8xbf16> to vector<8x8xbf16>
    %226 = vector.extract_strided_slice %194 {offsets = [0, 48], sizes = [8, 8], strides = [1, 1]} : vector<8x72xf32> to vector<8x8xf32>
    %cst_168 = arith.constant dense<0.000000e+00> : vector<8x8xf32>
    %227 = tpu.matmul %225, %226, %cst_168 {dimension_numbers = #tpu.dot_dimension_numbers<[1], [0], [0], [1], [0, 0, 1, 1], [], []>} : vector<8x8xbf16>, vector<8x8xf32>, vector<8x8xf32> -> vector<8x8xf32>
    %228 = arith.addf %223, %227 : vector<8x8xf32>
    %c7_169 = arith.constant 7 : index
    %c0_170 = arith.constant 0 : index
    %c0_171 = arith.constant 0 : index
    %229 = vector.load %arg11[%c7_169, %c0_170, %c0_171] : memref<9x8x8xbf16, #tpu.memory_space<vmem>>, vector<1x8x8xbf16>
    %230 = vector.shape_cast %229 : vector<1x8x8xbf16> to vector<8x8xbf16>
    %231 = vector.extract_strided_slice %194 {offsets = [0, 56], sizes = [8, 8], strides = [1, 1]} : vector<8x72xf32> to vector<8x8xf32>
    %cst_172 = arith.constant dense<0.000000e+00> : vector<8x8xf32>
    %232 = tpu.matmul %230, %231, %cst_172 {dimension_numbers = #tpu.dot_dimension_numbers<[1], [0], [0], [1], [0, 0, 1, 1], [], []>} : vector<8x8xbf16>, vector<8x8xf32>, vector<8x8xf32> -> vector<8x8xf32>
    %233 = arith.addf %228, %232 : vector<8x8xf32>
    %c8_173 = arith.constant 8 : index
    %c0_174 = arith.constant 0 : index
    %c0_175 = arith.constant 0 : index
    %234 = vector.load %arg11[%c8_173, %c0_174, %c0_175] : memref<9x8x8xbf16, #tpu.memory_space<vmem>>, vector<1x8x8xbf16>
    %235 = vector.shape_cast %234 : vector<1x8x8xbf16> to vector<8x8xbf16>
    %236 = vector.extract_strided_slice %194 {offsets = [0, 64], sizes = [8, 8], strides = [1, 1]} : vector<8x72xf32> to vector<8x8xf32>
    %cst_176 = arith.constant dense<0.000000e+00> : vector<8x8xf32>
    %237 = tpu.matmul %235, %236, %cst_176 {dimension_numbers = #tpu.dot_dimension_numbers<[1], [0], [0], [1], [0, 0, 1, 1], [], []>} : vector<8x8xbf16>, vector<8x8xf32>, vector<8x8xf32> -> vector<8x8xf32>
    %238 = arith.addf %233, %237 : vector<8x8xf32>
    %c0_177 = arith.constant 0 : index
    %c12_178 = arith.constant 12 : index
    %239 = vector.load %arg18[%c0_177, %c12_178] : memref<8x28xf32, #tpu.memory_space<vmem>>, vector<8x8xf32>
    tpu.vector_store %arg18[%c0_177, %c12_178], %238 {strides = array<i32>} : memref<8x28xf32, #tpu.memory_space<vmem>>, vector<8x8xf32>,
    %c0_179 = arith.constant 0 : index
    %c0_180 = arith.constant 0 : index
    %240 = vector.load %arg18[%c0_179, %c0_180] : memref<8x28xf32, #tpu.memory_space<vmem>>, vector<8x20xf32>
    %c15 = arith.constant 15 : index
    %c0_181 = arith.constant 0 : index
    %241 = vector.load %arg3[%c15, %c0_181] : memref<21x128xf32, #tpu.memory_space<vmem>>, vector<1x20xf32>
    %242 = vector.broadcast %241 : vector<1x20xf32> to vector<8x20xf32>
    %243 = arith.mulf %240, %242 : vector<8x20xf32>
    %c16_182 = arith.constant 16 : index
    %c0_183 = arith.constant 0 : index
    %244 = vector.load %arg3[%c16_182, %c0_183] : memref<21x128xf32, #tpu.memory_space<vmem>>, vector<1x20xf32>
    %245 = vector.broadcast %244 : vector<1x20xf32> to vector<8x20xf32>
    %246 = arith.addf %243, %245 : vector<8x20xf32>
    %cst_184 = arith.constant 0.000000e+00 : f32
    %247 = vector.broadcast %cst_184 : f32 to vector<8x20xf32>
    %248 = arith.maximumf %246, %247 : vector<8x20xf32>
    %c0_185 = arith.constant 0 : index
    %c0_186 = arith.constant 0 : index
    %249 = vector.load %arg14[%c0_185, %c0_186] : memref<20x16xf32, #tpu.memory_space<vmem>>, vector<20x16xf32>
    %cst_187 = arith.constant dense<0.000000e+00> : vector<8x16xf32>
    %250 = tpu.matmul %248, %249, %cst_187 {dimension_numbers = #tpu.dot_dimension_numbers<[1], [0], [0], [1], [0, 0, 1, 1], [], []>} : vector<8x20xf32>, vector<20x16xf32>, vector<8x16xf32> -> vector<8x16xf32>
    %c17 = arith.constant 17 : index
    %c0_188 = arith.constant 0 : index
    %251 = vector.load %arg3[%c17, %c0_188] : memref<21x128xf32, #tpu.memory_space<vmem>>, vector<1x16xf32>
    %252 = vector.broadcast %251 : vector<1x16xf32> to vector<8x16xf32>
    %253 = arith.mulf %250, %252 : vector<8x16xf32>
    %c18 = arith.constant 18 : index
    %c0_189 = arith.constant 0 : index
    %254 = vector.load %arg3[%c18, %c0_189] : memref<21x128xf32, #tpu.memory_space<vmem>>, vector<1x16xf32>
    %255 = vector.broadcast %254 : vector<1x16xf32> to vector<8x16xf32>
    %256 = arith.addf %253, %255 : vector<8x16xf32>
    %cst_190 = arith.constant 0.000000e+00 : f32
    %257 = vector.broadcast %cst_190 : f32 to vector<8x16xf32>
    %258 = arith.maximumf %256, %257 : vector<8x16xf32>
    %c0_191 = arith.constant 0 : index
    %c0_192 = arith.constant 0 : index
    %259 = vector.load %arg15[%c0_191, %c0_192] : memref<16x72xf32, #tpu.memory_space<vmem>>, vector<16x72xf32>
    %cst_193 = arith.constant dense<0.000000e+00> : vector<8x72xf32>
    %260 = tpu.matmul %258, %259, %cst_193 {dimension_numbers = #tpu.dot_dimension_numbers<[1], [0], [0], [1], [0, 0, 1, 1], [], []>} : vector<8x16xf32>, vector<16x72xf32>, vector<8x72xf32> -> vector<8x72xf32>
    %c0_194 = arith.constant 0 : index
    %c0_195 = arith.constant 0 : index
    %c0_196 = arith.constant 0 : index
    %261 = vector.load %arg11[%c0_194, %c0_195, %c0_196] : memref<9x8x8xbf16, #tpu.memory_space<vmem>>, vector<1x8x8xbf16>
    %262 = vector.shape_cast %261 : vector<1x8x8xbf16> to vector<8x8xbf16>
    %263 = vector.extract_strided_slice %260 {offsets = [0, 0], sizes = [8, 8], strides = [1, 1]} : vector<8x72xf32> to vector<8x8xf32>
    %cst_197 = arith.constant dense<0.000000e+00> : vector<8x8xf32>
    %264 = tpu.matmul %262, %263, %cst_197 {dimension_numbers = #tpu.dot_dimension_numbers<[1], [0], [0], [1], [0, 0, 1, 1], [], []>} : vector<8x8xbf16>, vector<8x8xf32>, vector<8x8xf32> -> vector<8x8xf32>
    %c1_198 = arith.constant 1 : index
    %c0_199 = arith.constant 0 : index
    %c0_200 = arith.constant 0 : index
    %265 = vector.load %arg11[%c1_198, %c0_199, %c0_200] : memref<9x8x8xbf16, #tpu.memory_space<vmem>>, vector<1x8x8xbf16>
    %266 = vector.shape_cast %265 : vector<1x8x8xbf16> to vector<8x8xbf16>
    %267 = vector.extract_strided_slice %260 {offsets = [0, 8], sizes = [8, 8], strides = [1, 1]} : vector<8x72xf32> to vector<8x8xf32>
    %cst_201 = arith.constant dense<0.000000e+00> : vector<8x8xf32>
    %268 = tpu.matmul %266, %267, %cst_201 {dimension_numbers = #tpu.dot_dimension_numbers<[1], [0], [0], [1], [0, 0, 1, 1], [], []>} : vector<8x8xbf16>, vector<8x8xf32>, vector<8x8xf32> -> vector<8x8xf32>
    %269 = arith.addf %264, %268 : vector<8x8xf32>
    %c2_202 = arith.constant 2 : index
    %c0_203 = arith.constant 0 : index
    %c0_204 = arith.constant 0 : index
    %270 = vector.load %arg11[%c2_202, %c0_203, %c0_204] : memref<9x8x8xbf16, #tpu.memory_space<vmem>>, vector<1x8x8xbf16>
    %271 = vector.shape_cast %270 : vector<1x8x8xbf16> to vector<8x8xbf16>
    %272 = vector.extract_strided_slice %260 {offsets = [0, 16], sizes = [8, 8], strides = [1, 1]} : vector<8x72xf32> to vector<8x8xf32>
    %cst_205 = arith.constant dense<0.000000e+00> : vector<8x8xf32>
    %273 = tpu.matmul %271, %272, %cst_205 {dimension_numbers = #tpu.dot_dimension_numbers<[1], [0], [0], [1], [0, 0, 1, 1], [], []>} : vector<8x8xbf16>, vector<8x8xf32>, vector<8x8xf32> -> vector<8x8xf32>
    %274 = arith.addf %269, %273 : vector<8x8xf32>
    %c3_206 = arith.constant 3 : index
    %c0_207 = arith.constant 0 : index
    %c0_208 = arith.constant 0 : index
    %275 = vector.load %arg11[%c3_206, %c0_207, %c0_208] : memref<9x8x8xbf16, #tpu.memory_space<vmem>>, vector<1x8x8xbf16>
    %276 = vector.shape_cast %275 : vector<1x8x8xbf16> to vector<8x8xbf16>
    %277 = vector.extract_strided_slice %260 {offsets = [0, 24], sizes = [8, 8], strides = [1, 1]} : vector<8x72xf32> to vector<8x8xf32>
    %cst_209 = arith.constant dense<0.000000e+00> : vector<8x8xf32>
    %278 = tpu.matmul %276, %277, %cst_209 {dimension_numbers = #tpu.dot_dimension_numbers<[1], [0], [0], [1], [0, 0, 1, 1], [], []>} : vector<8x8xbf16>, vector<8x8xf32>, vector<8x8xf32> -> vector<8x8xf32>
    %279 = arith.addf %274, %278 : vector<8x8xf32>
    %c4_210 = arith.constant 4 : index
    %c0_211 = arith.constant 0 : index
    %c0_212 = arith.constant 0 : index
    %280 = vector.load %arg11[%c4_210, %c0_211, %c0_212] : memref<9x8x8xbf16, #tpu.memory_space<vmem>>, vector<1x8x8xbf16>
    %281 = vector.shape_cast %280 : vector<1x8x8xbf16> to vector<8x8xbf16>
    %282 = vector.extract_strided_slice %260 {offsets = [0, 32], sizes = [8, 8], strides = [1, 1]} : vector<8x72xf32> to vector<8x8xf32>
    %cst_213 = arith.constant dense<0.000000e+00> : vector<8x8xf32>
    %283 = tpu.matmul %281, %282, %cst_213 {dimension_numbers = #tpu.dot_dimension_numbers<[1], [0], [0], [1], [0, 0, 1, 1], [], []>} : vector<8x8xbf16>, vector<8x8xf32>, vector<8x8xf32> -> vector<8x8xf32>
    %284 = arith.addf %279, %283 : vector<8x8xf32>
    %c5_214 = arith.constant 5 : index
    %c0_215 = arith.constant 0 : index
    %c0_216 = arith.constant 0 : index
    %285 = vector.load %arg11[%c5_214, %c0_215, %c0_216] : memref<9x8x8xbf16, #tpu.memory_space<vmem>>, vector<1x8x8xbf16>
    %286 = vector.shape_cast %285 : vector<1x8x8xbf16> to vector<8x8xbf16>
    %287 = vector.extract_strided_slice %260 {offsets = [0, 40], sizes = [8, 8], strides = [1, 1]} : vector<8x72xf32> to vector<8x8xf32>
    %cst_217 = arith.constant dense<0.000000e+00> : vector<8x8xf32>
    %288 = tpu.matmul %286, %287, %cst_217 {dimension_numbers = #tpu.dot_dimension_numbers<[1], [0], [0], [1], [0, 0, 1, 1], [], []>} : vector<8x8xbf16>, vector<8x8xf32>, vector<8x8xf32> -> vector<8x8xf32>
    %289 = arith.addf %284, %288 : vector<8x8xf32>
    %c6_218 = arith.constant 6 : index
    %c0_219 = arith.constant 0 : index
    %c0_220 = arith.constant 0 : index
    %290 = vector.load %arg11[%c6_218, %c0_219, %c0_220] : memref<9x8x8xbf16, #tpu.memory_space<vmem>>, vector<1x8x8xbf16>
    %291 = vector.shape_cast %290 : vector<1x8x8xbf16> to vector<8x8xbf16>
    %292 = vector.extract_strided_slice %260 {offsets = [0, 48], sizes = [8, 8], strides = [1, 1]} : vector<8x72xf32> to vector<8x8xf32>
    %cst_221 = arith.constant dense<0.000000e+00> : vector<8x8xf32>
    %293 = tpu.matmul %291, %292, %cst_221 {dimension_numbers = #tpu.dot_dimension_numbers<[1], [0], [0], [1], [0, 0, 1, 1], [], []>} : vector<8x8xbf16>, vector<8x8xf32>, vector<8x8xf32> -> vector<8x8xf32>
    %294 = arith.addf %289, %293 : vector<8x8xf32>
    %c7_222 = arith.constant 7 : index
    %c0_223 = arith.constant 0 : index
    %c0_224 = arith.constant 0 : index
    %295 = vector.load %arg11[%c7_222, %c0_223, %c0_224] : memref<9x8x8xbf16, #tpu.memory_space<vmem>>, vector<1x8x8xbf16>
    %296 = vector.shape_cast %295 : vector<1x8x8xbf16> to vector<8x8xbf16>
    %297 = vector.extract_strided_slice %260 {offsets = [0, 56], sizes = [8, 8], strides = [1, 1]} : vector<8x72xf32> to vector<8x8xf32>
    %cst_225 = arith.constant dense<0.000000e+00> : vector<8x8xf32>
    %298 = tpu.matmul %296, %297, %cst_225 {dimension_numbers = #tpu.dot_dimension_numbers<[1], [0], [0], [1], [0, 0, 1, 1], [], []>} : vector<8x8xbf16>, vector<8x8xf32>, vector<8x8xf32> -> vector<8x8xf32>
    %299 = arith.addf %294, %298 : vector<8x8xf32>
    %c8_226 = arith.constant 8 : index
    %c0_227 = arith.constant 0 : index
    %c0_228 = arith.constant 0 : index
    %300 = vector.load %arg11[%c8_226, %c0_227, %c0_228] : memref<9x8x8xbf16, #tpu.memory_space<vmem>>, vector<1x8x8xbf16>
    %301 = vector.shape_cast %300 : vector<1x8x8xbf16> to vector<8x8xbf16>
    %302 = vector.extract_strided_slice %260 {offsets = [0, 64], sizes = [8, 8], strides = [1, 1]} : vector<8x72xf32> to vector<8x8xf32>
    %cst_229 = arith.constant dense<0.000000e+00> : vector<8x8xf32>
    %303 = tpu.matmul %301, %302, %cst_229 {dimension_numbers = #tpu.dot_dimension_numbers<[1], [0], [0], [1], [0, 0, 1, 1], [], []>} : vector<8x8xbf16>, vector<8x8xf32>, vector<8x8xf32> -> vector<8x8xf32>
    %304 = arith.addf %299, %303 : vector<8x8xf32>
    %c0_230 = arith.constant 0 : index
    %c20 = arith.constant 20 : index
    %305 = vector.load %arg18[%c0_230, %c20] : memref<8x28xf32, #tpu.memory_space<vmem>>, vector<8x8xf32>
    tpu.vector_store %arg18[%c0_230, %c20], %304 {strides = array<i32>} : memref<8x28xf32, #tpu.memory_space<vmem>>, vector<8x8xf32>,
    %c0_231 = arith.constant 0 : index
    %c0_232 = arith.constant 0 : index
    %306 = vector.load %arg18[%c0_231, %c0_232] : memref<8x28xf32, #tpu.memory_space<vmem>>, vector<8x28xf32>
    %c19 = arith.constant 19 : index
    %c0_233 = arith.constant 0 : index
    %307 = vector.load %arg3[%c19, %c0_233] : memref<21x128xf32, #tpu.memory_space<vmem>>, vector<1x28xf32>
    %308 = vector.broadcast %307 : vector<1x28xf32> to vector<8x28xf32>
    %309 = arith.mulf %306, %308 : vector<8x28xf32>
    %c20_234 = arith.constant 20 : index
    %c0_235 = arith.constant 0 : index
    %310 = vector.load %arg3[%c20_234, %c0_235] : memref<21x128xf32, #tpu.memory_space<vmem>>, vector<1x28xf32>
    %311 = vector.broadcast %310 : vector<1x28xf32> to vector<8x28xf32>
    %312 = arith.addf %309, %311 : vector<8x28xf32>
    %c0_236 = arith.constant 0 : index
    %c0_237 = arith.constant 0 : index
    %313 = vector.load %arg16[%c0_236, %c0_237] : memref<8x28xf32, #tpu.memory_space<vmem>>, vector<8x28xf32>
    tpu.vector_store %arg16[%c0_236, %c0_237], %312 {strides = array<i32>} : memref<8x28xf32, #tpu.memory_space<vmem>>, vector<8x28xf32>,
    return
  }
}

</mosaic_0001>

<bundles_post_ra>
// kernel: _lambda_.1
= control target key start
LH: loop header
LB: loop body
LE: loop exit
PB: predicated region body
PF: predicated region fallthrough
CT: control target
= control target key end

     0   :  { %s4242_s0 = inlined_call_operand.vmem [shape: f32[128,147], index: 0, kind: input, shape index: {}]   ;;  %s4243_s1 = inlined_call_operand.vmem [shape: f32[147,8], index: 1, kind: input, shape index: {}]   ;;  %s4244_s2 = inlined_call_operand.vmem [shape: bf16[288,128], index: 2, kind: input, shape index: {}]   ;;  %s4245_s3 = inlined_call_operand.vmem [shape: f32[21,128], index: 3, kind: input, shape index: {}]   ;;  %s4246_s4 = inlined_call_operand.vmem [shape: bf16[9,32,32], index: 4, kind: input, shape index: {}]   ;;  %s4247_s5 = inlined_call_operand.vmem [shape: f32[8,16], index: 5, kind: input, shape index: {}]   ;;  %s4248_s6 = inlined_call_operand.vmem [shape: f32[16,72], index: 6, kind: input, shape index: {}]   ;;  %s4249_s7 = inlined_call_operand.vmem [shape: f32[16,16], index: 7, kind: input, shape index: {}]   ;;  %s4250_s8 = inlined_call_operand.vmem [shape: f32[16,72], index: 8, kind: input, shape index: {}]   ;;  %s4251_s9 = inlined_call_operand.vmem [shape: f32[24,12], index: 9, kind: input, shape index: {}]   ;;  %s4252_s10 = inlined_call_operand.vmem [shape: bf16[8,32], index: 10, kind: input, shape index: {}]   ;;  %s4253_s11 = inlined_call_operand.vmem [shape: bf16[9,8,8], index: 11, kind: input, shape index: {}]   ;;  %s4254_s12 = inlined_call_operand.vmem [shape: f32[12,16], index: 12, kind: input, shape index: {}]   ;;  %s4255_s13 = inlined_call_operand.vmem [shape: f32[16,72], index: 13, kind: input, shape index: {}]   ;;  %s4256_s14 = inlined_call_operand.vmem [shape: f32[20,16], index: 14, kind: input, shape index: {}]   ;;  %s4257_s15 = inlined_call_operand.vmem [shape: f32[16,72], index: 15, kind: input, shape index: {}]   ;;  %s4258_s16 = inlined_call_operand.hbm [shape: f32[8,28], index: 16, kind: output, shape index: {}]  }
   0x1   :  { %4260 = sst [smem:[#allocation7_spill]] %s4242_s0 }
   0x2   :  { %v101_v0 = vld [vmem:[%s4243_s1 + $0x78] sm:$0xff]  ;;  %v100_v1 = vld [vmem:[%s4243_s1 + $0x70] sm:$0xff]  ;;  %v99_v2 = vld [vmem:[%s4243_s1 + $0x68] sm:$0xff]  ;;  %vm156_vm0 = vcmask 1042432   ;;  %s4261_s28 = sld [smem:[#allocation7_spill]]  ;;  %vm107_vm1 = vcmask 154624  }
   0x3   :  { %160 = vmatpush.msra.mxu0 %v101_v0  ;;  %v98_v3 = vld [vmem:[%s4243_s1 + $0x60] sm:$0xff]  ;;  %v104_v4 = vld [vmem:[%s4243_s1 + $0x90] sm:$0x7]  ;;  %v103_v5 = vld [vmem:[%s4243_s1 + $0x88] sm:$0xff] }
   0x4   :  { %v97_v6 = vld [vmem:[%s4243_s1 + $0x58] sm:$0xff]  ;;  %v96_v7 = vld [vmem:[%s4243_s1 + $0x50] sm:$0xff]  ;;  %2781 = vmatpush.msk.msra.mxu1 %vm156_vm0, %v104_v4  ;;  %v102_v8 = vld [vmem:[%s4243_s1 + $0x80] sm:$0xff] }
   0x5   :  { %161 = vmatpush.msra.mxu0 %v100_v1  ;;  %v95_v9 = vld [vmem:[%s4243_s1 + $0x48] sm:$0xff]  ;;  %v94_v11 = vld [vmem:[%s4243_s1 + $0x40] sm:$0xff]  ;;  %v93_v12 = vld [vmem:[%s4243_s1 + $0x38] sm:$0xff] }
   0x6   :  { %239 = vmatpush.msra.mxu1 %v103_v5 }
   0x7   :  { %162 = vmatpush.msra.mxu0 %v99_v2 }
   0x8   :  { %v55_v10 = vld [vmem:[%s4261_s28 + $0x8] sm:$0xff]  ;;  %240 = vmatpush.msra.mxu1 %v102_v8 }
   0x9   :  { %163 = vmatpush.msra.mxu0 %v98_v3  ;;  %2782 = vmatmul.msk.f32.vlgmr.msra.gmra.mxu1 %vm107_vm1, %v55_v10 }
   0xb   :  { %164 = vmatpush.msra.mxu0 %v97_v6 }
   0xd   :  { %165 = vmatpush.msra.mxu0 %v96_v7 }
   0xf   :  { %166 = vmatpush.msra.mxu0 %v95_v9 }
  0x10   :  { %21 = vsyncpa [#allocation5], 0  ;;  %v92_v13 = vld [vmem:[%s4243_s1 + $0x30] sm:$0xff]  ;;  %v57_v14 = vld [vmem:[%s4261_s28 + $0x18] sm:$0xff]  ;;  %vm589_vm2 = vcmask 64512   ;;  %vm674_vm3 = vcmask 130048  }
  0x11   :  { %167 = vmatpush.msra.mxu0 %v94_v11  ;;  %v91_v15 = vld [vmem:[%s4243_s1 + $0x28] sm:$0xff]  ;;  %2783 = vmatmul.msk.f32.gmra.mxu1 %vm107_vm1, %v57_v14  ;;  %v90_v16 = vld [vmem:[%s4243_s1 + $0x20] sm:$0xff]  ;;  %v89_v17 = vld [vmem:[%s4243_s1 + $0x18] sm:$0xff]  ;;  %s3452_s21 = smov 112   ;;  %s3453_s22 = smov 120   ;;  %vm751_vm4 = vcmask 261120  }
  0x12   :  { %v88_v18 = vld [vmem:[%s4243_s1 + $0x10] sm:$0xff]  ;;  %v59_v19 = vld [vmem:[%s4261_s28 + $0x28] sm:$0xff]  ;;  %v86_v21 = vld [vmem:[%s4243_s1] sm:$0xff]  ;;  %s3454_s23 = smov 104   ;;  %s3455_s24 = smov 96   ;;  %vm1292_vm5 = vcmask 130112  }
  0x13   :  { %168 = vmatpush.msra.mxu0 %v93_v12  ;;  %v87_v20 = vld [vmem:[%s4243_s1 + $0x8] sm:$0xff]  ;;  %v54_v22 = vld [vmem:[%s4261_s28] sm:$0xff]  ;;  %v61_v23 = vld [vmem:[%s4261_s28 + $0x38] sm:$0xff]  ;;  %s3456_s25 = smov 80   ;;  %s3458_s26 = smov 72   ;;  %vm1986_vm6 = vcmask 195712  }
  0x14   :  { %v56_v24 = vld [vmem:[%s4261_s28 + $0x10] sm:$0xff]  ;;  %v63_v25 = vld [vmem:[%s4261_s28 + $0x48] sm:$0xff]  ;;  %v58_v26 = vld [vmem:[%s4261_s28 + $0x20] sm:$0xff]  ;;  %s3459_s0 = smov 8   ;;  %vm2014_vm7 = vcmask 195584   ;;  %vm2096_vm8 = vcmask 1043456  }
  0x15   :  { %169 = vmatpush.msra.mxu0 %v92_v13  ;;  %v65_v27 = vld [vmem:[%s4261_s28 + $0x58] sm:$0xff]  ;;  %v60_v28 = vld [vmem:[%s4261_s28 + $0x30] sm:$0xff]  ;;  %v67_v29 = vld [vmem:[%s4261_s28 + $0x68] sm:$0xff]  ;;  %vm2081_vm9 = vcmask 97280   ;;  %vm2421_vm10 = vcmask 162912   ;;  %vm2434_vm11 = vcmask 162816  }
  0x16   :  { %v62_v30 = vld [vmem:[%s4261_s28 + $0x40] sm:$0xff]  ;;  %v69_v31 = vld [vmem:[%s4261_s28 + $0x78] sm:$0xff]  ;;  %v64_v32 = vld [vmem:[%s4261_s28 + $0x50] sm:$0xff]  ;;  %vm2754_vm12 = vcmask 228512   ;;  %vm2763_vm13 = vcmask 228352  }
  0x17   :  { %170 = vmatpush.msra.mxu0 %v91_v15  ;;  %v71_v33 = vld [vmem:[%s4261_s28 + $0x88] sm:$0xff]  ;;  %v66_v34 = vld [vmem:[%s4261_s28 + $0x60] sm:$0xff]  ;;  %v73_v35 = vld [vmem:[%s4261_s28 + $0x98] sm:$0xff] }
  0x18   :  { %v68_v36 = vld [vmem:[%s4261_s28 + $0x70] sm:$0xff]  ;;  %v75_v37 = vld [vmem:[%s4261_s28 + $0xa8] sm:$0xff]  ;;  %v70_v38 = vld [vmem:[%s4261_s28 + $0x80] sm:$0xff] }
  0x19   :  { %171 = vmatpush.msra.mxu0 %v90_v16  ;;  %2784 = vmatmul.msk.f32.gmra.mxu1 %vm107_vm1, %v59_v19  ;;  %v77_v39 = vld [vmem:[%s4261_s28 + $0xb8] sm:$0xff]  ;;  %v72_v40 = vld [vmem:[%s4261_s28 + $0x90] sm:$0xff]  ;;  %v79_v41 = vld [vmem:[%s4261_s28 + $0xc8] sm:$0xff] }
  0x1a   :  { %v74_v42 = vld [vmem:[%s4261_s28 + $0xa0] sm:$0xff]  ;;  %v81_v43 = vld [vmem:[%s4261_s28 + $0xd8] sm:$0xff]  ;;  %v76_v44 = vld [vmem:[%s4261_s28 + $0xb0] sm:$0xff] }
  0x1b   :  { %172 = vmatpush.msra.mxu0 %v89_v17  ;;  %v83_v45 = vld [vmem:[%s4261_s28 + $0xe8] sm:$0xff]  ;;  %v78_v46 = vld [vmem:[%s4261_s28 + $0xc0] sm:$0xff]  ;;  %v85_v47 = vld [vmem:[%s4261_s28 + $0xf8] sm:$0xff] }
  0x1c   :  { %v80_v48 = vld [vmem:[%s4261_s28 + $0xd0] sm:$0xff]  ;;  %v82_v50 = vld [vmem:[%s4261_s28 + $0xe0] sm:$0xff] }
  0x1d   :  { %173 = vmatpush.msra.mxu0 %v88_v18  ;;  %v84_v52 = vld [vmem:[%s4261_s28 + $0xf0] sm:$0xff]  ;;  %v3404_v17 = vld [vmem:[%s4245_s3] ss:$0 sm:$0xff]  ;;  %s3463_s28 = smov [#allocation4]  }
  0x1e   :  { %s2770_s20 = sshll.u32 %s3463_s28, 4  ;;  %s2771_s20 = int_to_ptr.vmem [resolvable:$true] %s2770_s20 }
  0x1f   :  { %174 = vmatpush.msra.mxu0 %v87_v20 }
  0x21   :  { %175 = vmatpush.msra.mxu0 %v86_v21  ;;  %2785 = vmatmul.msk.f32.gmra.mxu1 %vm107_vm1, %v61_v23 }
  0x22   :  { %176 = vmatmul.f32.vlgmr.msra.gmra.mxu0 %v54_v22 }
  0x29   :  { %2786 = vmatmul.msk.f32.gmra.mxu1 %vm107_vm1, %v63_v25 }
  0x2a   :  { %179 = vmatmul.f32.gmra.mxu0 %v56_v24 }
  0x31   :  { %2787 = vmatmul.msk.f32.gmra.mxu1 %vm107_vm1, %v65_v27 }
  0x32   :  { %182 = vmatmul.f32.gmra.mxu0 %v58_v26 }
  0x39   :  { %2788 = vmatmul.msk.f32.gmra.mxu1 %vm107_vm1, %v67_v29 }
  0x3a   :  { %185 = vmatmul.f32.gmra.mxu0 %v60_v28 }
  0x41   :  { %2789 = vmatmul.msk.f32.gmra.mxu1 %vm107_vm1, %v69_v31 }
  0x42   :  { %188 = vmatmul.f32.gmra.mxu0 %v62_v30 }
  0x49   :  { %2790 = vmatmul.msk.f32.gmra.mxu1 %vm107_vm1, %v71_v33 }
  0x4a   :  { %191 = vmatmul.f32.gmra.mxu0 %v64_v32 }
  0x51   :  { %2791 = vmatmul.msk.f32.gmra.mxu1 %vm107_vm1, %v73_v35 }
  0x52   :  { %194 = vmatmul.f32.gmra.mxu0 %v66_v34 }
  0x59   :  { %2792 = vmatmul.msk.f32.gmra.mxu1 %vm107_vm1, %v75_v37 }
  0x5a   :  { %197 = vmatmul.f32.gmra.mxu0 %v68_v36 }
  0x61   :  { %2793 = vmatmul.msk.f32.gmra.mxu1 %vm107_vm1, %v77_v39 }
  0x62   :  { %200 = vmatmul.f32.gmra.mxu0 %v70_v38 }
  0x69   :  { %2794 = vmatmul.msk.f32.gmra.mxu1 %vm107_vm1, %v79_v41 }
  0x6a   :  { %203 = vmatmul.f32.gmra.mxu0 %v72_v40 }
  0x71   :  { %2795 = vmatmul.msk.f32.gmra.mxu1 %vm107_vm1, %v81_v43 }
  0x72   :  { %206 = vmatmul.f32.gmra.mxu0 %v74_v42 }
  0x79   :  { %2796 = vmatmul.msk.f32.gmra.mxu1 %vm107_vm1, %v83_v45 }
  0x7a   :  { %209 = vmatmul.f32.gmra.mxu0 %v76_v44 }
  0x81   :  { %2797 = vmatmul.msk.f32.gmra.mxu1 %vm107_vm1, %v85_v47 }
  0x82   :  { %212 = vmatmul.f32.gmra.mxu0 %v78_v46 }
  0x86   :  { %v3712_v49 = vpop.f32.mrf.mxu1 }
  0x8a   :  { %215 = vmatmul.f32.gmra.mxu0 %v80_v48 }
  0x8e   :  { %v3717_v51 = vpop.f32.mrf.mxu1 }
  0x92   :  { %218 = vmatmul.f32.gmra.mxu0 %v82_v50 }
  0x96   :  { %v3722_v53 = vpop.f32.mrf.mxu1 }
  0x9a   :  { %221 = vmatmul.f32.gmra.mxu0 %v84_v52 }
  0x9e   :  { %v3726_v55 = vpop.f32.mrf.mxu1 }
  0x9f   :  { %v3724_v54 = vpop.f32.mrf.mxu0 }
  0xa6   :  { %v3730_v57 = vpop.f32.mrf.mxu1 }
  0xa7   :  { %v3728_v56 = vpop.f32.mrf.mxu0 }
  0xae   :  { %v3734_v59 = vpop.f32.mrf.mxu1 }
  0xaf   :  { %v3732_v58 = vpop.f32.mrf.mxu0 }
  0xb6   :  { %v260_v61 = vpop.f32.mrf.mxu1 }
  0xb7   :  { %v186_v60 = vpop.f32.mrf.mxu0 }
  0xb8   :  { %v187_v52 = vadd.f32 %v3404_v17, %v186_v60 }
  0xbe   :  { %v263_v0 = vpop.f32.mrf.mxu1 }
  0xbf   :  { %v189_v62 = vpop.f32.mrf.mxu0 }
  0xc0   :  { %v190_v47 = vadd.f32 %v3404_v17, %v189_v62 }
  0xc6   :  { %v266_v2 = vpop.f32.mrf.mxu1 }
  0xc7   :  { %v192_v63 = vpop.f32.mrf.mxu0 }
  0xc8   :  { %v193_v44 = vadd.f32 %v3404_v17, %v192_v63  ;;  %v181_v63 = vadd.f32 %v3404_v17, %v3728_v56 }
  0xce   :  { %v269_v4 = vpop.f32.mrf.mxu1 }
  0xcf   :  { %v195_v1 = vpop.f32.mrf.mxu0 }
  0xd0   :  { %v196_v41 = vadd.f32 %v3404_v17, %v195_v1  ;;  %v255_v1 = vadd.f32 %v3730_v57, %v190_v47  ;;  %v3191_v47 = vld [vmem:[%s4244_s2 + $0x80] sm:$0xff] }
  0xd2   :  { %v261_v48 = vadd.f32 %v260_v61, %v196_v41  ;;  %v178_v61 = vadd.f32 %v3404_v17, %v3724_v54 }
  0xd4   :  { %v243_v57 = vadd.f32 %v3712_v49, %v178_v61  ;;  %v3177_v49 = vld [vmem:[%s4244_s2 + $0x10] sm:$0xff] }
  0xd6   :  { %v272_v6 = vpop.f32.mrf.mxu1  ;;  %v290_v54 = vmax.f32 %v243_v57, 0.0 }
  0xd7   :  { %v198_v3 = vpop.f32.mrf.mxu0 }
  0xd8   :  { %v199_v38 = vadd.f32 %v3404_v17, %v198_v3 }
  0xda   :  { %v264_v45 = vadd.f32 %v263_v0, %v199_v38  ;;  %v252_v0 = vadd.f32 %v3726_v55, %v187_v52  ;;  %v3175_v55 = vld [vmem:[%s4244_s2] sm:$0xff] }
  0xdc   :  { %v297_v3 = vmax.f32 %v264_v45, 0.0 }
  0xde   :  { %v275_v9 = vpop.f32.mrf.mxu1 }
  0xdf   :  { %v201_v5 = vpop.f32.mrf.mxu0 }
  0xe0   :  { %v202_v35 = vadd.f32 %v3404_v17, %v201_v5  ;;  %v258_v5 = vadd.f32 %v3734_v59, %v193_v44  ;;  %v246_v59 = vadd.f32 %v3717_v51, %v181_v63  ;;  %v3176_v51 = vld [vmem:[%s4244_s2 + $0x8] sm:$0xff] }
  0xe2   :  { %v267_v42 = vadd.f32 %v266_v2, %v202_v35  ;;  %v296_v2 = vmax.f32 %v261_v48, 0.0  ;;  %v295_v62 = vmax.f32 %v258_v5, 0.0  ;;  %v291_v56 = vmax.f32 %v246_v59, 0.0  ;;  %v3192_v5 = vld [vmem:[%s4244_s2 + $0x88] sm:$0xff] }
  0xe4   :  { %v298_v50 = vmax.f32 %v267_v42, 0.0 }
  0xe6   :  { %v278_v11 = vpop.f32.mrf.mxu1 }
  0xe7   :  { %v204_v7 = vpop.f32.mrf.mxu0 }
  0xe8   :  { %v205_v32 = vadd.f32 %v3404_v17, %v204_v7 }
  0xea   :  { %v270_v39 = vadd.f32 %v269_v4, %v205_v32  ;;  %v184_v4 = vadd.f32 %v3404_v17, %v3732_v58  ;;  %v293_v58 = vmax.f32 %v252_v0, 0.0 }
  0xec   :  { %v299_v46 = vmax.f32 %v270_v39, 0.0  ;;  %v249_v60 = vadd.f32 %v3722_v53, %v184_v4  ;;  %v3178_v53 = vld [vmem:[%s4244_s2 + $0x18] sm:$0xff] }
  0xee   :  { %v281_v13 = vpop.f32.mrf.mxu1  ;;  %v292_v7 = vmax.f32 %v249_v60, 0.0 }
  0xef   :  { %v207_v8 = vpop.f32.mrf.mxu0 }
  0xf0   :  { %v208_v29 = vadd.f32 %v3404_v17, %v207_v8  ;;  %v3179_v8 = vld [vmem:[%s4244_s2 + $0x20] sm:$0xff] }
  0xf2   :  { %v273_v36 = vadd.f32 %v272_v6, %v208_v29  ;;  %v294_v6 = vmax.f32 %v255_v1, 0.0 }
  0xf4   :  { %v300_v43 = vmax.f32 %v273_v36, 0.0 }
  0xf6   :  { %v284_v15 = vpop.f32.mrf.mxu1 }
  0xf7   :  { %v210_v10 = vpop.f32.mrf.mxu0 }
  0xf8   :  { %v211_v26 = vadd.f32 %v3404_v17, %v210_v10  ;;  %v3181_v10 = vld [vmem:[%s4244_s2 + $0x30] sm:$0xff] }
  0xfa   :  { %v276_v33 = vadd.f32 %v275_v9, %v211_v26  ;;  %v3180_v9 = vld [vmem:[%s4244_s2 + $0x28] sm:$0xff] }
  0xfc   :  { %v301_v40 = vmax.f32 %v276_v33, 0.0 }
  0xfe   :  { %v287_v20 = vpop.f32.mrf.mxu1 }
  0xff   :  { %v213_v12 = vpop.f32.mrf.mxu0 }
 0x100   :  { %v214_v23 = vadd.f32 %v3404_v17, %v213_v12  ;;  %v3183_v12 = vld [vmem:[%s4244_s2 + $0x40] sm:$0xff] }
 0x102   :  { %v279_v30 = vadd.f32 %v278_v11, %v214_v23  ;;  %v3182_v11 = vld [vmem:[%s4244_s2 + $0x38] sm:$0xff] }
 0x103   :  { %v3186_v23 = vld [vmem:[%s4244_s2 + $0x58] sm:$0xff] }
 0x104   :  { %v302_v37 = vmax.f32 %v279_v30, 0.0 }
 0x107   :  { %v216_v14 = vpop.f32.mrf.mxu0 }
 0x108   :  { %v217_v21 = vadd.f32 %v3404_v17, %v216_v14 }
 0x10a   :  { %v282_v27 = vadd.f32 %v281_v13, %v217_v21 }
 0x10c   :  { %v303_v34 = vmax.f32 %v282_v27, 0.0 }
 0x10f   :  { %v219_v16 = vpop.f32.mrf.mxu0 }
 0x110   :  { %v220_v18 = vadd.f32 %v3404_v17, %v219_v16 }
 0x112   :  { %v285_v24 = vadd.f32 %v284_v15, %v220_v18  ;;  %v3184_v15 = vld [vmem:[%s4244_s2 + $0x48] sm:$0xff]  ;;  %v3185_v18 = vld [vmem:[%s4244_s2 + $0x50] sm:$0xff] }
 0x114   :  { %v304_v31 = vmax.f32 %v285_v24, 0.0 }
 0x117   :  { %v222_v19 = vpop.f32.mrf.mxu0 }
 0x118   :  { %v223_v22 = vadd.f32 %v3404_v17, %v222_v19 }
 0x11a   :  { %v288_v25 = vadd.f32 %v287_v20, %v223_v22 }
 0x11c   :  { %v305_v28 = vmax.f32 %v288_v25, 0.0 }
 0x11e   :  { %450 = vmatpush.msra.mxu2 %v305_v28  ;;  %v3187_v28 = vld [vmem:[%s4244_s2 + $0x60] sm:$0xff] }
 0x120   :  { %451 = vmatpush.msra.mxu2 %v304_v31  ;;  %v3188_v31 = vld [vmem:[%s4244_s2 + $0x68] sm:$0xff] }
 0x122   :  { %452 = vmatpush.msra.mxu2 %v303_v34  ;;  %v3189_v34 = vld [vmem:[%s4244_s2 + $0x70] sm:$0xff] }
 0x124   :  { %453 = vmatpush.msra.mxu2 %v302_v37 }
 0x126   :  { %454 = vmatpush.msra.mxu2 %v301_v40  ;;  %v3190_v40 = vld [vmem:[%s4244_s2 + $0x78] sm:$0xff]  ;;  %s3457_s2 = smov 64  }
 0x128   :  { %455 = vmatpush.msra.mxu2 %v300_v43 }
 0x12a   :  { %456 = vmatpush.msra.mxu2 %v299_v46 }
 0x12c   :  { %457 = vmatpush.msra.mxu2 %v298_v50 }
 0x12e   :  { %458 = vmatpush.msra.mxu2 %v297_v3 }
 0x130   :  { %459 = vmatpush.msra.mxu2 %v296_v2 }
 0x132   :  { %460 = vmatpush.msra.mxu2 %v295_v62 }
 0x134   :  { %461 = vmatpush.msra.mxu2 %v294_v6 }
 0x136   :  { %462 = vmatpush.msra.mxu2 %v293_v58 }
 0x138   :  { %463 = vmatpush.msra.mxu2 %v292_v7 }
 0x13a   :  { %464 = vmatpush.msra.mxu2 %v291_v56 }
 0x13c   :  { %465 = vmatpush.msra.mxu2 %v290_v54 }
 0x13d   :  { %466 = vmatmul.bf16.vlgmr.msra.gmra.mxu2 %v3175_v55 }
 0x14d   :  { %471 = vmatmul.bf16.gmra.mxu2 %v3176_v51  ;;  %v614_v51 = vld [vmem:[%s4247_s5] sm:$0xff] }
 0x14e   :  { %642 = vmatpush.msra.mxu3 %v614_v51 }
 0x15d   :  { %476 = vmatmul.bf16.gmra.mxu2 %v3177_v49 }
 0x16d   :  { %481 = vmatmul.bf16.gmra.mxu2 %v3178_v53 }
 0x17d   :  { %486 = vmatmul.bf16.gmra.mxu2 %v3179_v8 }
 0x18d   :  { %491 = vmatmul.bf16.gmra.mxu2 %v3180_v9 }
 0x19d   :  { %496 = vmatmul.bf16.gmra.mxu2 %v3181_v10 }
 0x1ad   :  { %501 = vmatmul.bf16.gmra.mxu2 %v3182_v11 }
 0x1bd   :  { %506 = vmatmul.bf16.gmra.mxu2 %v3183_v12 }
 0x1c0   :  { %v467_v13 = vpop.f32.mrf.mxu2 }
 0x1c8   :  { %v469_v14 = vpop.f32.mrf.mxu2 }
 0x1cd   :  { %511 = vmatmul.bf16.gmra.mxu2 %v3184_v15 }
 0x1d0   :  { %v472_v16 = vpop.f32.mrf.mxu2 }
 0x1d8   :  { %v474_v17 = vpop.f32.mrf.mxu2 }
 0x1dd   :  { %516 = vmatmul.bf16.gmra.mxu2 %v3185_v18  ;;  %v3405_v18 = vld [vmem:[%s4245_s3 + $0x1] ss:$0 sm:$0xff] }
 0x1e0   :  { %v477_v19 = vpop.f32.mrf.mxu2 }
 0x1e1   :  { %v557_v20 = vmax.f32 %v467_v13, %v477_v19 }
 0x1e8   :  { %v479_v21 = vpop.f32.mrf.mxu2 }
 0x1e9   :  { %v558_v22 = vmax.f32 %v469_v14, %v479_v21 }
 0x1ed   :  { %521 = vmatmul.bf16.gmra.mxu2 %v3186_v23 }
 0x1f0   :  { %v482_v24 = vpop.f32.mrf.mxu2 }
 0x1f1   :  { %v559_v25 = vmax.f32 %v472_v16, %v482_v24 }
 0x1f8   :  { %v484_v26 = vpop.f32.mrf.mxu2 }
 0x1f9   :  { %v560_v27 = vmax.f32 %v474_v17, %v484_v26 }
 0x1fd   :  { %526 = vmatmul.bf16.gmra.mxu2 %v3187_v28 }
 0x200   :  { %v487_v29 = vpop.f32.mrf.mxu2 }
 0x208   :  { %v489_v30 = vpop.f32.mrf.mxu2 }
 0x20d   :  { %531 = vmatmul.bf16.gmra.mxu2 %v3188_v31 }
 0x210   :  { %v492_v32 = vpop.f32.mrf.mxu2 }
 0x218   :  { %v494_v33 = vpop.f32.mrf.mxu2 }
 0x21d   :  { %536 = vmatmul.bf16.gmra.mxu2 %v3189_v34 }
 0x220   :  { %v497_v35 = vpop.f32.mrf.mxu2 }
 0x221   :  { %v561_v36 = vmax.f32 %v487_v29, %v497_v35 }
 0x223   :  { %v573_v37 = vmax.f32 %v557_v20, %v561_v36 }
 0x228   :  { %v499_v38 = vpop.f32.mrf.mxu2 }
 0x229   :  { %v562_v39 = vmax.f32 %v489_v30, %v499_v38 }
 0x22b   :  { %v574_v41 = vmax.f32 %v558_v22, %v562_v39  ;;  %v3406_v22 = vld [vmem:[%s4245_s3 + $0x2] ss:$0 sm:$0xff] }
 0x22d   :  { %541 = vmatmul.bf16.gmra.mxu2 %v3190_v40 }
 0x230   :  { %v502_v42 = vpop.f32.mrf.mxu2 }
 0x231   :  { %v563_v43 = vmax.f32 %v492_v32, %v502_v42 }
 0x233   :  { %v575_v44 = vmax.f32 %v559_v25, %v563_v43 }
 0x238   :  { %v504_v45 = vpop.f32.mrf.mxu2 }
 0x239   :  { %v564_v46 = vmax.f32 %v494_v33, %v504_v45  ;;  %v673_v45 = vld [vmem:[%s4248_s6 + $0x8] sm:$0xff] }
 0x23a   :  { %701 = vmatpush.msrb.mxu3 %v673_v45  ;;  %v3193_v45 = vld [vmem:[%s4246_s4] sm:$0xff] }
 0x23b   :  { %v576_v48 = vmax.f32 %v560_v27, %v564_v46  ;;  %v672_v46 = vld [vmem:[%s4248_s6] sm:$0xff]  ;;  %s3451_s6 = smov 88  }
 0x23c   :  { %702 = vmatpush.msrb.mxu3 %v672_v46 }
 0x23d   :  { %546 = vmatmul.bf16.gmra.mxu2 %v3191_v47  ;;  %v3407_v47 = vld [vmem:[%s4245_s3 + $0x3] ss:$0 sm:$0xff] }
 0x240   :  { %v507_v50 = vpop.f32.mrf.mxu2 }
 0x248   :  { %v509_v52 = vpop.f32.mrf.mxu2 }
 0x24d   :  { %551 = vmatmul.bf16.gmra.mxu2 %v3192_v5 }
 0x250   :  { %v512_v3 = vpop.f32.mrf.mxu2 }
 0x258   :  { %v514_v4 = vpop.f32.mrf.mxu2 }
 0x260   :  { %v517_v1 = vpop.f32.mrf.mxu2 }
 0x261   :  { %v565_v9 = vmax.f32 %v507_v50, %v517_v1 }
 0x268   :  { %v519_v2 = vpop.f32.mrf.mxu2 }
 0x269   :  { %v566_v63 = vmax.f32 %v509_v52, %v519_v2 }
 0x270   :  { %v522_v0 = vpop.f32.mrf.mxu2 }
 0x271   :  { %v567_v20 = vmax.f32 %v512_v3, %v522_v0 }
 0x278   :  { %v524_v62 = vpop.f32.mrf.mxu2 }
 0x279   :  { %v568_v61 = vmax.f32 %v514_v4, %v524_v62 }
 0x280   :  { %v527_v60 = vpop.f32.mrf.mxu2 }
 0x288   :  { %v529_v6 = vpop.f32.mrf.mxu2 }
 0x290   :  { %v532_v59 = vpop.f32.mrf.mxu2 }
 0x298   :  { %v534_v58 = vpop.f32.mrf.mxu2 }
 0x2a0   :  { %v537_v57 = vpop.f32.mrf.mxu2 }
 0x2a1   :  { %v569_v53 = vmax.f32 %v527_v60, %v537_v57 }
 0x2a3   :  { %v577_v11 = vmax.f32 %v565_v9, %v569_v53 }
 0x2a5   :  { %v581_v14 = vmax.f32 %v573_v37, %v577_v11 }
 0x2a8   :  { %v539_v7 = vpop.f32.mrf.mxu2 }
 0x2a9   :  { %v570_v56 = vmax.f32 %v529_v6, %v539_v7 }
 0x2ab   :  { %v578_v55 = vmax.f32 %v566_v63, %v570_v56 }
 0x2ad   :  { %v582_v54 = vmax.f32 %v574_v41, %v578_v55 }
 0x2b0   :  { %v542_v49 = vpop.f32.mrf.mxu2 }
 0x2b1   :  { %v571_v17 = vmax.f32 %v532_v59, %v542_v49 }
 0x2b3   :  { %v579_v24 = vmax.f32 %v567_v20, %v571_v17 }
 0x2b5   :  { %v583_v27 = vmax.f32 %v575_v44, %v579_v24 }
 0x2b8   :  { %v544_v8 = vpop.f32.mrf.mxu2 }
 0x2b9   :  { %v572_v10 = vmax.f32 %v534_v58, %v544_v8 }
 0x2bb   :  { %v580_v12 = vmax.f32 %v568_v61, %v572_v10 }
 0x2bd   :  { %v584_v13 = vmax.f32 %v576_v48, %v580_v12  ;;  %v3408_v48 = vld [vmem:[%s4245_s3 + $0x4] ss:$0 sm:$0xff] }
 0x2c0   :  { %v547_v15 = vpop.f32.mrf.mxu2 }
 0x2c1   :  { %v585_v16 = vmax.f32 %v581_v14, %v547_v15 }
 0x2c3   :  { %590 = vst.msk [vmem:[#allocation2] sm:$0xff] %vm589_vm2, %v585_v16 }
 0x2c8   :  { %v549_v19 = vpop.f32.mrf.mxu2 }
 0x2c9   :  { %v586_v21 = vmax.f32 %v582_v54, %v549_v19 }
 0x2ca   :  { %v594_v23 = vld [vmem:[#allocation2] sm:$0xff] }
 0x2cb   :  { %591 = vst.msk [vmem:[#allocation2 + $0x8] sm:$0xff] %vm589_vm2, %v586_v21  ;;  %v600_v25 = vmul.f32 %v3405_v18, %v594_v23 }
 0x2cd   :  { %v606_v26 = vadd.f32 %v3406_v22, %v600_v25  ;;  %v3195_v25 = vld [vmem:[%s4246_s4 + $0x10] sm:$0xff] }
 0x2cf   :  { %v610_v28 = vmax.f32 %v606_v26, 0.0 }
 0x2d0   :  { %v552_v29 = vpop.f32.mrf.mxu2 }
 0x2d1   :  { %v587_v30 = vmax.f32 %v583_v27, %v552_v29  ;;  %2870 = vmatmul.msk.f32.vlgmr.msra.gmra.mxu3 %vm589_vm2, %v610_v28 }
 0x2d2   :  { %v595_v31 = vld [vmem:[#allocation2 + $0x8] sm:$0xff] }
 0x2d3   :  { %592 = vst.msk [vmem:[#allocation2 + $0x10] sm:$0xff] %vm589_vm2, %v587_v30  ;;  %v601_v32 = vmul.f32 %v3405_v18, %v595_v31 }
 0x2d5   :  { %v607_v33 = vadd.f32 %v3406_v22, %v601_v32 }
 0x2d7   :  { %v611_v34 = vmax.f32 %v607_v33, 0.0 }
 0x2d8   :  { %v554_v35 = vpop.f32.mrf.mxu2 }
 0x2d9   :  { %v588_v36 = vmax.f32 %v584_v13, %v554_v35  ;;  %2871 = vmatmul.msk.f32.gmra.mxu3 %vm589_vm2, %v611_v34 }
 0x2da   :  { %v596_v37 = vld [vmem:[#allocation2 + $0x10] sm:$0xff] }
 0x2db   :  { %593 = vst.msk [vmem:[#allocation2 + $0x18] sm:$0xff] %vm589_vm2, %v588_v36  ;;  %v602_v38 = vmul.f32 %v3405_v18, %v596_v37 }
 0x2dd   :  { %v608_v39 = vadd.f32 %v3406_v22, %v602_v38  ;;  %v3196_v38 = vld [vmem:[%s4246_s4 + $0x18] sm:$0xff] }
 0x2df   :  { %v612_v40 = vmax.f32 %v608_v39, 0.0 }
 0x2e1   :  { %2872 = vmatmul.msk.f32.gmra.mxu3 %vm589_vm2, %v612_v40 }
 0x2e2   :  { %v597_v41 = vld [vmem:[#allocation2 + $0x18] sm:$0xff] }
 0x2e3   :  { %v603_v42 = vmul.f32 %v3405_v18, %v597_v41 }
 0x2e5   :  { %v609_v43 = vadd.f32 %v3406_v22, %v603_v42 }
 0x2e7   :  { %v613_v44 = vmax.f32 %v609_v43, 0.0 }
 0x2e9   :  { %2873 = vmatmul.msk.f32.gmra.mxu3 %vm589_vm2, %v613_v44 }
 0x354   :  { %v644_v50 = vpop.f32.mrf.mxu3 }
 0x355   :  { %v658_v52 = vmul.f32 %v3407_v47, %v644_v50 }
 0x357   :  { %v664_v5 = vadd.f32 %v3408_v48, %v658_v52 }
 0x359   :  { %v668_v3 = vmax.f32 %v664_v5, 0.0 }
 0x35b   :  { %2874 = vmatmul.msk.f32.vlgmr.msrb.gmra.mxu3 %vm674_vm3, %v668_v3  ;;  %v3199_v3 = vld [vmem:[%s4246_s4 + $0x30] sm:$0xff] }
 0x35c   :  { %v647_v4 = vpop.f32.mrf.mxu3 }
 0x35d   :  { %v659_v1 = vmul.f32 %v3407_v47, %v647_v4  ;;  %v3201_v4 = vld [vmem:[%s4246_s4 + $0x40] sm:$0xff] }
 0x35f   :  { %v665_v2 = vadd.f32 %v3408_v48, %v659_v1  ;;  %v3194_v1 = vld [vmem:[%s4246_s4 + $0x8] sm:$0xff] }
 0x361   :  { %v669_v63 = vmax.f32 %v665_v2, 0.0  ;;  %v3200_v2 = vld [vmem:[%s4246_s4 + $0x38] sm:$0xff] }
 0x363   :  { %2875 = vmatmul.msk.f32.gmra.mxu3 %vm674_vm3, %v669_v63  ;;  %v3202_v63 = vld [vmem:[%s4246_s4 + $0x48] sm:$0xff] }
 0x364   :  { %v650_v0 = vpop.f32.mrf.mxu3 }
 0x365   :  { %v660_v62 = vmul.f32 %v3407_v47, %v650_v0 }
 0x367   :  { %v666_v61 = vadd.f32 %v3408_v48, %v660_v62  ;;  %v3197_v62 = vld [vmem:[%s4246_s4 + $0x20] sm:$0xff] }
 0x369   :  { %v670_v60 = vmax.f32 %v666_v61, 0.0 }
 0x36b   :  { %2876 = vmatmul.msk.f32.gmra.mxu3 %vm674_vm3, %v670_v60 }
 0x36c   :  { %v653_v6 = vpop.f32.mrf.mxu3 }
 0x36d   :  { %v661_v59 = vmul.f32 %v3407_v47, %v653_v6 }
 0x36f   :  { %v667_v58 = vadd.f32 %v3408_v48, %v661_v59 }
 0x371   :  { %v671_v57 = vmax.f32 %v667_v58, 0.0 }
 0x373   :  { %2877 = vmatmul.msk.f32.gmra.mxu3 %vm674_vm3, %v671_v57  ;;  %v3205_v57 = vld [vmem:[%s4246_s4 + $0x60] sm:$0xff] }
 0x3de   :  { %v3835_v7 = vpop.f32.mrf.mxu3 }
 0x3e6   :  { %v3837_v56 = vpop.f32.mrf.mxu3 }
 0x3e7   :  { %v3259_v49 = vpack.i.bf16 %v3835_v7, %v3837_v56 }
 0x3ee   :  { %v3839_v55 = vpop.f32.mrf.mxu3 }
 0x3f6   :  { %v713_v54 = vpop.f32.mrf.mxu3 }
 0x3f7   :  { %v3269_v51 = vpack.i.bf16 %v3839_v55, %v713_v54 }
 0x3f9   :  { %3270 = vrot.lane.b32.xlu2 %v3269_v51, %s3451_s6  ;;  %3255 = vrot.lane.b32.xlu1 %v3269_v51, %s3452_s21 }
 0x3fa   :  { %3245 = vrot.lane.b32.xlu0 %v3269_v51, %s3453_s22 }
 0x401   :  { %3275 = vrot.lane.b32.xlu2 %v3269_v51, %s3454_s23  ;;  %3260 = vrot.lane.b32.xlu1 %v3259_v49, %s3452_s21 }
 0x402   :  { %3250 = vrot.lane.b32.xlu0 %v3259_v49, %s3453_s22 }
 0x409   :  { %3280 = vrot.lane.b32.xlu2 %v3259_v49, %s3454_s23  ;;  %3265 = vrot.lane.b32.xlu1 %v3259_v49, %s3451_s6 }
 0x40a   :  { %3285 = vrot.lane.b32.xlu0 %v3269_v51, %s3455_s24 }
 0x411   :  { %3305 = vrot.lane.b32.xlu2 %v3269_v51, %s3456_s25  ;;  %3295 = vrot.lane.b32.xlu1 %v3269_v51, %s3457_s2 }
 0x412   :  { %3290 = vrot.lane.b32.xlu0 %v3259_v49, %s3455_s24 }
 0x419   :  { %3310 = vrot.lane.b32.xlu2 %v3259_v49, %s3456_s25  ;;  %3300 = vrot.lane.b32.xlu1 %v3259_v49, %s3457_s2 }
 0x41a   :  { %3315 = vrot.lane.b32.xlu0 %v3269_v51, %s3458_s26  ;;  %v3203_v51 = vld [vmem:[%s4246_s4 + $0x50] sm:$0xff] }
 0x422   :  { %3320 = vrot.lane.b32.xlu0 %v3259_v49, %s3458_s26  ;;  %v3204_v49 = vld [vmem:[%s4246_s4 + $0x58] sm:$0xff] }
 0x453   :  { %v3860_v53 = vpop.permute.xlu2 %3270 }
 0x454   :  { %v3272_v47 = vunpack.i.l.bf16 %v3860_v53  ;;  %v3273_v50 = vunpack.i.h.bf16 %v3860_v53  ;;  %v3209_v53 = vld [vmem:[%s4246_s4 + $0x80] sm:$0xff] }
 0x45b   :  { %v3276_v8 = vpop.permute.xlu2 %3275 }
 0x45c   :  { %v3277_v9 = vunpack.i.l.bf16 %v3276_v8  ;;  %v3278_v10 = vunpack.i.h.bf16 %v3276_v8 }
 0x45e   :  { %937 = vmatpush.msrb.mxu1 %v3277_v9 }
 0x460   :  { %938 = vmatpush.msrb.mxu1 %v3278_v10  ;;  %v3210_v10 = vld [vmem:[%s4246_s4 + $0x88] sm:$0xff] }
 0x463   :  { %v3281_v11 = vpop.permute.xlu2 %3280 }
 0x464   :  { %v3282_v12 = vunpack.i.l.bf16 %v3281_v11  ;;  %v3283_v13 = vunpack.i.h.bf16 %v3281_v11 }
 0x466   :  { %939 = vmatpush.msrb.mxu1 %v3282_v12 }
 0x468   :  { %940 = vmatpush.msrb.mxu1 %v3283_v13 }
 0x469   :  { %2928 = vmatmul.msk.bf16.vlgmr.msrb.gmra.mxu1 %vm751_vm4, %v3199_v3 }
 0x46b   :  { %v3306_v14 = vpop.permute.xlu2 %3305  ;;  %v3256_v26 = vpop.permute.xlu1 %3255 }
 0x46c   :  { %v3307_v15 = vunpack.i.l.bf16 %v3306_v14  ;;  %v3246_v16 = vpop.permute.xlu0 %3245  ;;  %v3308_v18 = vunpack.i.h.bf16 %v3306_v14  ;;  %v3257_v31 = vunpack.i.l.bf16 %v3256_v26  ;;  %v3258_v33 = vunpack.i.h.bf16 %v3256_v26 }
 0x46d   :  { %v3247_v17 = vunpack.i.l.bf16 %v3246_v16  ;;  %v3248_v19 = vunpack.i.h.bf16 %v3246_v16 }
 0x46e   :  { %1129 = vmatpush.msra.mxu1 %v3307_v15 }
 0x46f   :  { %770 = vmatpush.msra.mxu3 %v3247_v17 }
 0x470   :  { %1130 = vmatpush.msra.mxu1 %v3308_v18 }
 0x471   :  { %771 = vmatpush.msra.mxu3 %v3248_v19 }
 0x473   :  { %v3311_v20 = vpop.permute.xlu2 %3310  ;;  %v3261_v32 = vpop.permute.xlu1 %3260 }
 0x474   :  { %v3312_v21 = vunpack.i.l.bf16 %v3311_v20  ;;  %v3251_v22 = vpop.permute.xlu0 %3250  ;;  %v3313_v24 = vunpack.i.h.bf16 %v3311_v20  ;;  %v3262_v34 = vunpack.i.l.bf16 %v3261_v32  ;;  %v3263_v37 = vunpack.i.h.bf16 %v3261_v32 }
 0x475   :  { %v3252_v23 = vunpack.i.l.bf16 %v3251_v22  ;;  %v3253_v27 = vunpack.i.h.bf16 %v3251_v22 }
 0x476   :  { %1131 = vmatpush.msra.mxu1 %v3312_v21 }
 0x477   :  { %772 = vmatpush.msra.mxu3 %v3252_v23 }
 0x478   :  { %1132 = vmatpush.msra.mxu1 %v3313_v24 }
 0x479   :  { %773 = vmatpush.msra.mxu3 %v3253_v27  ;;  %2929 = vmatmul.msk.bf16.gmra.mxu1 %vm751_vm4, %v3200_v2 }
 0x47a   :  { %2890 = vmatmul.msk.bf16.vlgmr.msra.gmra.mxu3 %vm751_vm4, %v3195_v25 }
 0x47b   :  { %813 = vmatpush.msrb.mxu3 %v713_v54  ;;  %v3266_v48 = vpop.permute.xlu1 %3265  ;;  %v3208_v54 = vld [vmem:[%s4246_s4 + $0x78] sm:$0xff] }
 0x47c   :  { %v3286_v28 = vpop.permute.xlu0 %3285  ;;  %v3267_v52 = vunpack.i.l.bf16 %v3266_v48  ;;  %v3268_v5 = vunpack.i.h.bf16 %v3266_v48 }
 0x47d   :  { %814 = vmatpush.msrb.mxu3 %v3839_v55  ;;  %v3287_v29 = vunpack.i.l.bf16 %v3286_v28  ;;  %v3288_v30 = vunpack.i.h.bf16 %v3286_v28  ;;  %v3206_v55 = vld [vmem:[%s4246_s4 + $0x68] sm:$0xff] }
 0x47f   :  { %815 = vmatpush.msrb.mxu3 %v3837_v56  ;;  %1001 = vmatpush.msrb.mxu0 %v3287_v29  ;;  %v3198_v56 = vld [vmem:[%s4246_s4 + $0x28] sm:$0xff] }
 0x481   :  { %816 = vmatpush.msrb.mxu3 %v3835_v7  ;;  %1002 = vmatpush.msrb.mxu0 %v3288_v30  ;;  %v3207_v7 = vld [vmem:[%s4246_s4 + $0x70] sm:$0xff] }
 0x483   :  { %873 = vmatpush.msra.mxu3 %v3257_v31  ;;  %v3296_v0 = vpop.permute.xlu1 %3295 }
 0x484   :  { %v3291_v35 = vpop.permute.xlu0 %3290  ;;  %v3297_v61 = vunpack.i.l.bf16 %v3296_v0  ;;  %v3298_v6 = vunpack.i.h.bf16 %v3296_v0 }
 0x485   :  { %874 = vmatpush.msra.mxu3 %v3258_v33  ;;  %v3292_v36 = vunpack.i.l.bf16 %v3291_v35  ;;  %v3293_v39 = vunpack.i.h.bf16 %v3291_v35 }
 0x487   :  { %875 = vmatpush.msra.mxu3 %v3262_v34  ;;  %1003 = vmatpush.msrb.mxu0 %v3292_v36 }
 0x489   :  { %876 = vmatpush.msra.mxu3 %v3263_v37  ;;  %1004 = vmatpush.msrb.mxu0 %v3293_v39 }
 0x48a   :  { %2891 = vmatmul.msk.bf16.gmra.mxu3 %vm751_vm4, %v3196_v38  ;;  %2942 = vmatmul.msk.bf16.vlgmr.msrb.gmra.mxu0 %vm751_vm4, %v3201_v4 }
 0x48b   :  { %v3301_v60 = vpop.permute.xlu1 %3300  ;;  %2970 = vmatmul.msk.bf16.vlgmr.msra.gmra.mxu1 %vm751_vm4, %v3205_v57 }
 0x48c   :  { %v3316_v40 = vpop.permute.xlu0 %3315  ;;  %v3302_v59 = vunpack.i.l.bf16 %v3301_v60  ;;  %v3303_v58 = vunpack.i.h.bf16 %v3301_v60 }
 0x48d   :  { %v3317_v41 = vunpack.i.l.bf16 %v3316_v40  ;;  %v3318_v42 = vunpack.i.h.bf16 %v3316_v40 }
 0x48f   :  { %1193 = vmatpush.msra.mxu0 %v3317_v41 }
 0x491   :  { %1194 = vmatpush.msra.mxu0 %v3318_v42 }
 0x494   :  { %v3321_v43 = vpop.permute.xlu0 %3320 }
 0x495   :  { %v3322_v44 = vunpack.i.l.bf16 %v3321_v43  ;;  %v3323_v46 = vunpack.i.h.bf16 %v3321_v43 }
 0x497   :  { %1195 = vmatpush.msra.mxu0 %v3322_v44 }
 0x499   :  { %1196 = vmatpush.msra.mxu0 %v3323_v46 }
 0x49a   :  { %2900 = vmatmul.msk.bf16.vlgmr.msrb.gmra.mxu3 %vm751_vm4, %v3193_v45  ;;  %2943 = vmatmul.msk.bf16.gmra.mxu0 %vm751_vm4, %v3202_v63  ;;  %v1377_v45 = vld [vmem:[%s4250_s8 + $0x8] sm:$0xff] }
 0x49b   :  { %1065 = vmatpush.msrb.mxu3 %v3272_v47  ;;  %2971 = vmatmul.msk.bf16.gmra.mxu1 %vm751_vm4, %v3206_v55 }
 0x49c   :  { %3229 = vmatpush.msrb.mxu2 %v1377_v45  ;;  %1404 = vmatpush.msrb.mxu0 %v1377_v45 }
 0x49d   :  { %1066 = vmatpush.msrb.mxu3 %v3273_v50 }
 0x49f   :  { %1067 = vmatpush.msrb.mxu3 %v3267_v52 }
 0x4a1   :  { %1068 = vmatpush.msrb.mxu3 %v3268_v5 }
 0x4aa   :  { %2901 = vmatmul.msk.bf16.gmra.mxu3 %vm751_vm4, %v3194_v1  ;;  %2984 = vmatmul.msk.bf16.vlgmr.msra.gmra.mxu0 %vm751_vm4, %v3207_v7 }
 0x4ba   :  { %2914 = vmatmul.msk.bf16.vlgmr.msra.gmra.mxu3 %vm751_vm4, %v3197_v62  ;;  %2985 = vmatmul.msk.bf16.gmra.mxu0 %vm751_vm4, %v3208_v54 }
 0x4bb   :  { %1257 = vmatpush.msra.mxu3 %v3297_v61 }
 0x4bd   :  { %1258 = vmatpush.msra.mxu3 %v3298_v6 }
 0x4bf   :  { %1259 = vmatpush.msra.mxu3 %v3302_v59 }
 0x4c1   :  { %1260 = vmatpush.msra.mxu3 %v3303_v58 }
 0x4ca   :  { %2915 = vmatmul.msk.bf16.gmra.mxu3 %vm751_vm4, %v3198_v56 }
 0x4da   :  { %2956 = vmatmul.msk.bf16.vlgmr.msrb.gmra.mxu3 %vm751_vm4, %v3203_v51 }
 0x4e6   :  { %v942_v21 = vpop.f32.mrf.mxu1 }
 0x4ea   :  { %2957 = vmatmul.msk.bf16.gmra.mxu3 %vm751_vm4, %v3204_v49 }
 0x4ee   :  { %v944_v24 = vpop.f32.mrf.mxu1 }
 0x4f6   :  { %v947_v27 = vpop.f32.mrf.mxu1 }
 0x4fa   :  { %2998 = vmatmul.msk.bf16.vlgmr.msra.gmra.mxu3 %vm751_vm4, %v3209_v53 }
 0x4fd   :  { %v775_v8 = vpop.f32.mrf.mxu3 }
 0x4fe   :  { %v949_v30 = vpop.f32.mrf.mxu1 }
 0x505   :  { %v777_v9 = vpop.f32.mrf.mxu3 }
 0x507   :  { %v1006_v22 = vpop.f32.mrf.mxu0 }
 0x508   :  { %v1134_v36 = vpop.f32.mrf.mxu1 }
 0x50a   :  { %2999 = vmatmul.msk.bf16.gmra.mxu3 %vm751_vm4, %v3210_v10 }
 0x50d   :  { %v780_v11 = vpop.f32.mrf.mxu3 }
 0x50f   :  { %v1008_v25 = vpop.f32.mrf.mxu0 }
 0x510   :  { %v1136_v46 = vpop.f32.mrf.mxu1 }
 0x515   :  { %v782_v12 = vpop.f32.mrf.mxu3 }
 0x517   :  { %v1011_v29 = vpop.f32.mrf.mxu0 }
 0x518   :  { %v1139_v61 = vpop.f32.mrf.mxu1 }
 0x51d   :  { %v818_v13 = vpop.f32.mrf.mxu3 }
 0x51e   :  { %v819_v14 = vadd.f32 %v818_v13, %v775_v8 }
 0x51f   :  { %v1013_v32 = vpop.f32.mrf.mxu0 }
 0x520   :  { %v1141_v49 = vpop.f32.mrf.mxu1 }
 0x525   :  { %v820_v15 = vpop.f32.mrf.mxu3 }
 0x526   :  { %v821_v37 = vadd.f32 %v820_v15, %v777_v9  ;;  %v1317_v15 = vld [vmem:[%s4249_s7] sm:$0xff] }
 0x527   :  { %v1198_v40 = vpop.f32.mrf.mxu0 }
 0x52d   :  { %v823_v16 = vpop.f32.mrf.mxu3 }
 0x52e   :  { %v824_v17 = vadd.f32 %v823_v16, %v780_v11 }
 0x52f   :  { %v1200_v5 = vpop.f32.mrf.mxu0 }
 0x535   :  { %v825_v18 = vpop.f32.mrf.mxu3 }
 0x536   :  { %v826_v2 = vadd.f32 %v825_v18, %v782_v12  ;;  %v3409_v18 = vld [vmem:[%s4245_s3 + $0x5] ss:$0 sm:$0xff] }
 0x537   :  { %v1203_v7 = vpop.f32.mrf.mxu0 }
 0x53d   :  { %v878_v19 = vpop.f32.mrf.mxu3 }
 0x53e   :  { %v888_v33 = vadd.f32 %v878_v19, %v819_v14  ;;  %v1318_v14 = vld [vmem:[%s4249_s7 + $0x8] sm:$0xff]  ;;  %v1376_v19 = vld [vmem:[%s4250_s8] sm:$0xff] }
 0x53f   :  { %v1205_v10 = vpop.f32.mrf.mxu0  ;;  %1345 = vmatpush.msrb.mxu1 %v1318_v14  ;;  %3230 = vmatpush.msrb.mxu2 %v1376_v19 }
 0x540   :  { %v952_v35 = vadd.f32 %v942_v21, %v888_v33  ;;  %1405 = vmatpush.msrb.mxu0 %v1376_v19 }
 0x541   :  { %1346 = vmatpush.msrb.mxu1 %v1317_v15 }
 0x542   :  { %v1016_v38 = vadd.f32 %v1006_v22, %v952_v35  ;;  %v3410_v22 = vld [vmem:[%s4245_s3 + $0x6] ss:$0 sm:$0xff] }
 0x545   :  { %v880_v20 = vpop.f32.mrf.mxu3 }
 0x546   :  { %v889_v39 = vadd.f32 %v880_v20, %v821_v37 }
 0x548   :  { %v953_v43 = vadd.f32 %v944_v24, %v889_v39  ;;  %v3411_v39 = vld [vmem:[%s4245_s3 + $0x7] ss:$0 sm:$0xff] }
 0x54a   :  { %v1017_v47 = vadd.f32 %v1008_v25, %v953_v43 }
 0x54d   :  { %v883_v23 = vpop.f32.mrf.mxu3 }
 0x54e   :  { %v890_v48 = vadd.f32 %v883_v23, %v824_v17 }
 0x550   :  { %v954_v4 = vadd.f32 %v947_v27, %v890_v48 }
 0x552   :  { %v1018_v0 = vadd.f32 %v1011_v29, %v954_v4 }
 0x555   :  { %v885_v26 = vpop.f32.mrf.mxu3 }
 0x556   :  { %v891_v62 = vadd.f32 %v885_v26, %v826_v2 }
 0x558   :  { %v955_v58 = vadd.f32 %v949_v30, %v891_v62 }
 0x55a   :  { %v1019_v55 = vadd.f32 %v1013_v32, %v955_v58  ;;  %v3211_v58 = vld [vmem:[%s4246_s4] sm:$0xff] }
 0x55d   :  { %v1070_v28 = vpop.f32.mrf.mxu3 }
 0x55e   :  { %v1080_v41 = vadd.f32 %v1070_v28, %v1016_v38 }
 0x560   :  { %v1144_v44 = vadd.f32 %v1134_v36, %v1080_v41 }
 0x562   :  { %v1208_v50 = vadd.f32 %v1198_v40, %v1144_v44  ;;  %v3412_v40 = vld [vmem:[%s4245_s3 + $0x8] ss:$0 sm:$0xff] }
 0x565   :  { %v1072_v31 = vpop.f32.mrf.mxu3 }
 0x566   :  { %v1081_v52 = vadd.f32 %v1072_v31, %v1017_v47 }
 0x568   :  { %v1145_v63 = vadd.f32 %v1136_v46, %v1081_v52 }
 0x56a   :  { %v1209_v60 = vadd.f32 %v1200_v5, %v1145_v63 }
 0x56d   :  { %v1075_v34 = vpop.f32.mrf.mxu3 }
 0x56e   :  { %v1082_v6 = vadd.f32 %v1075_v34, %v1018_v0 }
 0x570   :  { %v1146_v56 = vadd.f32 %v1139_v61, %v1082_v6 }
 0x572   :  { %v1210_v54 = vadd.f32 %v1203_v7, %v1146_v56  ;;  %v3212_v7 = vld [vmem:[%s4246_s4 + $0x8] sm:$0xff] }
 0x575   :  { %v1077_v42 = vpop.f32.mrf.mxu3 }
 0x576   :  { %v1083_v51 = vadd.f32 %v1077_v42, %v1019_v55 }
 0x578   :  { %v1147_v9 = vadd.f32 %v1141_v49, %v1083_v51  ;;  %v3213_v49 = vld [vmem:[%s4246_s4 + $0x10] sm:$0xff] }
 0x57a   :  { %v1211_v11 = vadd.f32 %v1205_v10, %v1147_v9 }
 0x57d   :  { %v1262_v3 = vpop.f32.mrf.mxu3 }
 0x57e   :  { %v1272_v1 = vadd.f32 %v1262_v3, %v1208_v50 }
 0x580   :  { %1280 = vrot.lane.b32.xlu1 %v1272_v1, %s3459_s0 }
 0x585   :  { %v1264_v59 = vpop.f32.mrf.mxu3 }
 0x586   :  { %v1273_v57 = vadd.f32 %v1264_v59, %v1209_v60 }
 0x588   :  { %1282 = vrot.lane.b32.xlu2 %v1273_v57, %s3459_s0 }
 0x58d   :  { %v1267_v53 = vpop.f32.mrf.mxu3 }
 0x58e   :  { %v1274_v8 = vadd.f32 %v1267_v53, %v1210_v54 }
 0x590   :  { %1284 = vrot.lane.b32.xlu0 %v1274_v8, %s3459_s0 }
 0x595   :  { %v1269_v12 = vpop.f32.mrf.mxu3 }
 0x596   :  { %v1275_v13 = vadd.f32 %v1269_v12, %v1211_v11  ;;  %v3214_v12 = vld [vmem:[%s4246_s4 + $0x18] sm:$0xff] }
 0x598   :  { %1286 = vrot.lane.b32.xlu1 %v1275_v13, %s3459_s0 }
 0x5e2   :  { %v1283_v16 = vpop.permute.xlu2 %1282 }
 0x5e3   :  { %1294 = vst.msk [vmem:[#allocation2 + $0x8] sm:$0xff] %vm1292_vm5, %v1283_v16 }
 0x5ea   :  { %v1298_v23 = vld [vmem:[#allocation2 + $0x8] sm:$0xff] }
 0x5eb   :  { %v1304_v26 = vmul.f32 %v3409_v18, %v1298_v23 }
 0x5ed   :  { %v1310_v28 = vadd.f32 %v3410_v22, %v1304_v26 }
 0x5ef   :  { %v1314_v29 = vmax.f32 %v1310_v28, 0.0 }
 0x5f2   :  { %v1281_v17 = vpop.permute.xlu1 %1280 }
 0x5f3   :  { %1293 = vst.msk [vmem:[#allocation2] sm:$0xff] %vm1292_vm5, %v1281_v17 }
 0x5fa   :  { %v1297_v20 = vld [vmem:[#allocation2] sm:$0xff] }
 0x5fb   :  { %v1303_v21 = vmul.f32 %v3409_v18, %v1297_v20 }
 0x5fd   :  { %v1309_v24 = vadd.f32 %v3410_v22, %v1303_v21  ;;  %v3215_v21 = vld [vmem:[%s4246_s4 + $0x20] sm:$0xff] }
 0x5ff   :  { %v1313_v25 = vmax.f32 %v1309_v24, 0.0 }
 0x601   :  { %3000 = vmatmul.msk.f32.vlgmr.msrb.gmra.mxu1 %vm674_vm3, %v1313_v25 }
 0x602   :  { %v1285_v27 = vpop.permute.xlu0 %1284 }
 0x603   :  { %1295 = vst.msk [vmem:[#allocation2 + $0x10] sm:$0xff] %vm1292_vm5, %v1285_v27 }
 0x609   :  { %3001 = vmatmul.msk.f32.gmra.mxu1 %vm674_vm3, %v1314_v29 }
 0x60a   :  { %v1287_v30 = vpop.permute.xlu1 %1286  ;;  %v1299_v31 = vld [vmem:[#allocation2 + $0x10] sm:$0xff] }
 0x60b   :  { %1296 = vst.msk [vmem:[#allocation2 + $0x18] sm:$0xff] %vm1292_vm5, %v1287_v30  ;;  %v1305_v32 = vmul.f32 %v3409_v18, %v1299_v31 }
 0x60d   :  { %v1311_v33 = vadd.f32 %v3410_v22, %v1305_v32  ;;  %v3217_v32 = vld [vmem:[%s4246_s4 + $0x30] sm:$0xff] }
 0x60f   :  { %v1315_v34 = vmax.f32 %v1311_v33, 0.0 }
 0x611   :  { %3002 = vmatmul.msk.f32.gmra.mxu1 %vm674_vm3, %v1315_v34 }
 0x612   :  { %v1300_v35 = vld [vmem:[#allocation2 + $0x18] sm:$0xff] }
 0x613   :  { %v1306_v36 = vmul.f32 %v3409_v18, %v1300_v35 }
 0x615   :  { %v1312_v37 = vadd.f32 %v3410_v22, %v1306_v36 }
 0x617   :  { %v1316_v38 = vmax.f32 %v1312_v37, 0.0 }
 0x619   :  { %3003 = vmatmul.msk.f32.gmra.mxu1 %vm674_vm3, %v1316_v38  ;;  %v3219_v38 = vld [vmem:[%s4246_s4 + $0x40] sm:$0xff] }
 0x67e   :  { %v1348_v41 = vpop.f32.mrf.mxu1 }
 0x67f   :  { %v1362_v42 = vmul.f32 %v3411_v39, %v1348_v41 }
 0x681   :  { %v1368_v43 = vadd.f32 %v3412_v40, %v1362_v42  ;;  %v3216_v42 = vld [vmem:[%s4246_s4 + $0x28] sm:$0xff] }
 0x683   :  { %v1372_v44 = vmax.f32 %v1368_v43, 0.0 }
 0x685   :  { %3004 = vmatmul.msk.f32.vlgmr.msrb.gmra.mxu0 %vm674_vm3, %v1372_v44 }
 0x686   :  { %v1351_v45 = vpop.f32.mrf.mxu1 }
 0x687   :  { %v1363_v46 = vmul.f32 %v3411_v39, %v1351_v45 }
 0x689   :  { %v1369_v47 = vadd.f32 %v3412_v40, %v1363_v46 }
 0x68b   :  { %v1373_v48 = vmax.f32 %v1369_v47, 0.0 }
 0x68d   :  { %3005 = vmatmul.msk.f32.gmra.mxu0 %vm674_vm3, %v1373_v48 }
 0x68e   :  { %v1354_v50 = vpop.f32.mrf.mxu1 }
 0x68f   :  { %v1364_v52 = vmul.f32 %v3411_v39, %v1354_v50 }
 0x691   :  { %v1370_v5 = vadd.f32 %v3412_v40, %v1364_v52 }
 0x693   :  { %v1374_v3 = vmax.f32 %v1370_v5, 0.0 }
 0x695   :  { %3006 = vmatmul.msk.f32.gmra.mxu0 %vm674_vm3, %v1374_v3  ;;  %v3218_v3 = vld [vmem:[%s4246_s4 + $0x38] sm:$0xff] }
 0x696   :  { %v1357_v4 = vpop.f32.mrf.mxu1 }
 0x697   :  { %v1365_v1 = vmul.f32 %v3411_v39, %v1357_v4 }
 0x699   :  { %v1371_v2 = vadd.f32 %v3412_v40, %v1365_v1 }
 0x69b   :  { %v1375_v63 = vmax.f32 %v1371_v2, 0.0 }
 0x69d   :  { %3007 = vmatmul.msk.f32.vlgmr.msrb.gmra.mxu2 %vm674_vm3, %v1375_v63  ;;  %v3220_v63 = vld [vmem:[%s4246_s4 + $0x48] sm:$0xff] }
 0x702   :  { %v1407_v0 = vpop.f32.mrf.mxu0 }
 0x70a   :  { %v1410_v62 = vpop.f32.mrf.mxu0 }
 0x70b   :  { %v3329_v61 = vpack.i.bf16 %v1407_v0, %v1410_v62 }
 0x70d   :  { %3330 = vrot.lane.b32.xlu0 %v3329_v61, %s3453_s22 }
 0x712   :  { %v1413_v60 = vpop.f32.mrf.mxu0 }
 0x720   :  { %v1416_v6 = vpop.f32.mrf.mxu2 }
 0x721   :  { %1514 = vmatpush.msra.mxu1 %v1416_v6  ;;  %v3344_v59 = vpack.i.bf16 %v1413_v60, %v1416_v6  ;;  %v3224_v6 = vld [vmem:[%s4246_s4 + $0x68] sm:$0xff] }
 0x723   :  { %3345 = vrot.lane.b32.xlu0 %v3344_v59, %s3454_s23  ;;  %3335 = vrot.lane.b32.xlu1 %v3344_v59, %s3452_s21 }
 0x724   :  { %3325 = vrot.lane.b32.xlu2 %v3344_v59, %s3453_s22  ;;  %1515 = vmatpush.msra.mxu1 %v1413_v60  ;;  %v3222_v60 = vld [vmem:[%s4246_s4 + $0x58] sm:$0xff] }
 0x726   :  { %1516 = vmatpush.msra.mxu1 %v1410_v62  ;;  %v3223_v62 = vld [vmem:[%s4246_s4 + $0x60] sm:$0xff] }
 0x728   :  { %1517 = vmatpush.msra.mxu1 %v1407_v0  ;;  %v3221_v0 = vld [vmem:[%s4246_s4 + $0x50] sm:$0xff] }
 0x729   :  { %3030 = vmatmul.msk.bf16.vlgmr.msra.gmra.mxu1 %vm751_vm4, %v3211_v58  ;;  %v3227_v58 = vld [vmem:[%s4246_s4 + $0x80] sm:$0xff] }
 0x72b   :  { %3360 = vrot.lane.b32.xlu0 %v3344_v59, %s3451_s6  ;;  %3350 = vrot.lane.b32.xlu1 %v3329_v61, %s3454_s23 }
 0x72c   :  { %3340 = vrot.lane.b32.xlu2 %v3329_v61, %s3452_s21 }
 0x733   :  { %3375 = vrot.lane.b32.xlu0 %v3344_v59, %s3456_s25  ;;  %3365 = vrot.lane.b32.xlu1 %v3329_v61, %s3455_s24 }
 0x734   :  { %3355 = vrot.lane.b32.xlu2 %v3344_v59, %s3455_s24 }
 0x739   :  { %3031 = vmatmul.msk.bf16.gmra.mxu1 %vm751_vm4, %v3212_v7 }
 0x73b   :  { %3390 = vrot.lane.b32.xlu0 %v3344_v59, %s3457_s2  ;;  %3380 = vrot.lane.b32.xlu1 %v3329_v61, %s3456_s25 }
 0x73c   :  { %3370 = vrot.lane.b32.xlu2 %v3329_v61, %s3451_s6 }
 0x743   :  { %3395 = vrot.lane.b32.xlu1 %v3329_v61, %s3458_s26 }
 0x744   :  { %3385 = vrot.lane.b32.xlu2 %v3344_v59, %s3458_s26  ;;  %v3226_v59 = vld [vmem:[%s4246_s4 + $0x78] sm:$0xff] }
 0x74c   :  { %3400 = vrot.lane.b32.xlu2 %v3329_v61, %s3457_s2  ;;  %v3225_v61 = vld [vmem:[%s4246_s4 + $0x70] sm:$0xff] }
 0x77e   :  { %v3326_v57 = vpop.permute.xlu2 %3325 }
 0x77f   :  { %v3327_v56 = vunpack.i.l.bf16 %v3326_v57  ;;  %v3331_v55 = vpop.permute.xlu0 %3330  ;;  %v3328_v54 = vunpack.i.h.bf16 %v3326_v57  ;;  %v3228_v57 = vld [vmem:[%s4246_s4 + $0x88] sm:$0xff]  ;;  %s3460_s4 = smov 16  }
 0x780   :  { %v3332_v51 = vunpack.i.l.bf16 %v3331_v55  ;;  %v3333_v53 = vunpack.i.h.bf16 %v3331_v55 }
 0x781   :  { %1471 = vmatpush.msrb.mxu3 %v3327_v56 }
 0x783   :  { %1472 = vmatpush.msrb.mxu3 %v3328_v54 }
 0x785   :  { %1473 = vmatpush.msrb.mxu3 %v3332_v51 }
 0x786   :  { %v3341_v8 = vpop.permute.xlu2 %3340 }
 0x787   :  { %1474 = vmatpush.msrb.mxu3 %v3333_v53  ;;  %v3342_v19 = vunpack.i.l.bf16 %v3341_v8  ;;  %v3343_v22 = vunpack.i.h.bf16 %v3341_v8 }
 0x788   :  { %3020 = vmatmul.msk.bf16.vlgmr.msrb.gmra.mxu3 %vm751_vm4, %v3213_v49 }
 0x78e   :  { %v3356_v9 = vpop.permute.xlu2 %3355 }
 0x78f   :  { %v3357_v10 = vunpack.i.l.bf16 %v3356_v9  ;;  %v3358_v11 = vunpack.i.h.bf16 %v3356_v9 }
 0x791   :  { %1699 = vmatpush.msrb.mxu1 %v3357_v10 }
 0x793   :  { %1700 = vmatpush.msrb.mxu1 %v3358_v11 }
 0x795   :  { %v3346_v13 = vpop.permute.xlu0 %3345  ;;  %v3336_v14 = vpop.permute.xlu1 %3335 }
 0x796   :  { %v3347_v15 = vunpack.i.l.bf16 %v3346_v13  ;;  %v3337_v16 = vunpack.i.l.bf16 %v3336_v14  ;;  %v3338_v17 = vunpack.i.h.bf16 %v3336_v14  ;;  %v3348_v18 = vunpack.i.h.bf16 %v3346_v13  ;;  %v3371_v20 = vpop.permute.xlu2 %3370 }
 0x797   :  { %v3372_v29 = vunpack.i.l.bf16 %v3371_v20  ;;  %v3373_v30 = vunpack.i.h.bf16 %v3371_v20 }
 0x798   :  { %3021 = vmatmul.msk.bf16.gmra.mxu3 %vm751_vm4, %v3214_v12  ;;  %1573 = vmatpush.msra.mxu0 %v3337_v16 }
 0x799   :  { %1636 = vmatpush.msra.mxu3 %v3347_v15 }
 0x79a   :  { %1574 = vmatpush.msra.mxu0 %v3338_v17 }
 0x79b   :  { %1637 = vmatpush.msra.mxu3 %v3348_v18 }
 0x79c   :  { %1575 = vmatpush.msra.mxu0 %v3342_v19 }
 0x79d   :  { %v3361_v23 = vpop.permute.xlu0 %3360  ;;  %v3351_v24 = vpop.permute.xlu1 %3350 }
 0x79e   :  { %v3362_v25 = vunpack.i.l.bf16 %v3361_v23  ;;  %v3352_v26 = vunpack.i.l.bf16 %v3351_v24  ;;  %1576 = vmatpush.msra.mxu0 %v3343_v22  ;;  %v3363_v27 = vunpack.i.h.bf16 %v3361_v23  ;;  %v3353_v28 = vunpack.i.h.bf16 %v3351_v24  ;;  %v3386_v31 = vpop.permute.xlu2 %3385 }
 0x79f   :  { %3044 = vmatmul.msk.bf16.vlgmr.msra.gmra.mxu0 %vm751_vm4, %v3215_v21  ;;  %v3387_v39 = vunpack.i.l.bf16 %v3386_v31  ;;  %v3388_v41 = vunpack.i.h.bf16 %v3386_v31 }
 0x7a0   :  { %1638 = vmatpush.msra.mxu3 %v3352_v26  ;;  %1762 = vmatpush.msrb.mxu0 %v3362_v25 }
 0x7a2   :  { %1639 = vmatpush.msra.mxu3 %v3353_v28  ;;  %1763 = vmatpush.msrb.mxu0 %v3363_v27 }
 0x7a4   :  { %1764 = vmatpush.msrb.mxu0 %v3372_v29 }
 0x7a5   :  { %v3376_v33 = vpop.permute.xlu0 %3375  ;;  %v3366_v34 = vpop.permute.xlu1 %3365 }
 0x7a6   :  { %v3377_v35 = vunpack.i.l.bf16 %v3376_v33  ;;  %v3367_v36 = vunpack.i.l.bf16 %v3366_v34  ;;  %1765 = vmatpush.msrb.mxu0 %v3373_v30  ;;  %v3368_v37 = vunpack.i.h.bf16 %v3366_v34  ;;  %v3378_v40 = vunpack.i.h.bf16 %v3376_v33  ;;  %v3401_v47 = vpop.permute.xlu2 %3400  ;;  %v1519_v7 = vpop.f32.mrf.mxu1 }
 0x7a7   :  { %v3402_v52 = vunpack.i.l.bf16 %v3401_v47  ;;  %v3403_v5 = vunpack.i.h.bf16 %v3401_v47 }
 0x7a8   :  { %3058 = vmatmul.msk.bf16.vlgmr.msra.gmra.mxu3 %vm751_vm4, %v3217_v32  ;;  %1701 = vmatpush.msrb.mxu1 %v3367_v36 }
 0x7a9   :  { %1825 = vmatpush.msrb.mxu3 %v3377_v35 }
 0x7aa   :  { %1702 = vmatpush.msrb.mxu1 %v3368_v37 }
 0x7ab   :  { %1826 = vmatpush.msrb.mxu3 %v3378_v40  ;;  %3072 = vmatmul.msk.bf16.vlgmr.msrb.gmra.mxu1 %vm751_vm4, %v3219_v38 }
 0x7ac   :  { %1888 = vmatpush.msra.mxu1 %v3387_v39 }
 0x7ad   :  { %v3391_v43 = vpop.permute.xlu0 %3390  ;;  %v3381_v44 = vpop.permute.xlu1 %3380 }
 0x7ae   :  { %1889 = vmatpush.msra.mxu1 %v3388_v41  ;;  %v3392_v45 = vunpack.i.l.bf16 %v3391_v43  ;;  %v3382_v46 = vunpack.i.l.bf16 %v3381_v44  ;;  %v3393_v48 = vunpack.i.h.bf16 %v3391_v43  ;;  %v3383_v50 = vunpack.i.h.bf16 %v3381_v44  ;;  %v1521_v55 = vpop.f32.mrf.mxu1 }
 0x7af   :  { %3045 = vmatmul.msk.bf16.gmra.mxu0 %vm751_vm4, %v3216_v42 }
 0x7b0   :  { %1827 = vmatpush.msrb.mxu3 %v3382_v46  ;;  %1951 = vmatpush.msra.mxu0 %v3392_v45 }
 0x7b2   :  { %1828 = vmatpush.msrb.mxu3 %v3383_v50  ;;  %1952 = vmatpush.msra.mxu0 %v3393_v48 }
 0x7b4   :  { %1953 = vmatpush.msra.mxu0 %v3402_v52 }
 0x7b5   :  { %v3396_v4 = vpop.permute.xlu1 %3395 }
 0x7b6   :  { %v3397_v1 = vunpack.i.l.bf16 %v3396_v4  ;;  %1954 = vmatpush.msra.mxu0 %v3403_v5  ;;  %v3398_v2 = vunpack.i.h.bf16 %v3396_v4  ;;  %v1524_v51 = vpop.f32.mrf.mxu1 }
 0x7b8   :  { %3059 = vmatmul.msk.bf16.gmra.mxu3 %vm751_vm4, %v3218_v3  ;;  %1890 = vmatpush.msra.mxu1 %v3397_v1 }
 0x7ba   :  { %1891 = vmatpush.msra.mxu1 %v3398_v2 }
 0x7bb   :  { %3073 = vmatmul.msk.bf16.gmra.mxu1 %vm751_vm4, %v3220_v63 }
 0x7be   :  { %v1526_v8 = vpop.f32.mrf.mxu1 }
 0x7bf   :  { %3086 = vmatmul.msk.bf16.vlgmr.msrb.gmra.mxu0 %vm751_vm4, %v3221_v0 }
 0x7c8   :  { %3100 = vmatmul.msk.bf16.vlgmr.msrb.gmra.mxu3 %vm751_vm4, %v3223_v62 }
 0x7cb   :  { %3114 = vmatmul.msk.bf16.vlgmr.msra.gmra.mxu1 %vm751_vm4, %v3225_v61 }
 0x7cf   :  { %3087 = vmatmul.msk.bf16.gmra.mxu0 %vm751_vm4, %v3222_v60 }
 0x7d8   :  { %3101 = vmatmul.msk.bf16.gmra.mxu3 %vm751_vm4, %v3224_v6 }
 0x7db   :  { %3115 = vmatmul.msk.bf16.gmra.mxu1 %vm751_vm4, %v3226_v59 }
 0x7df   :  { %3128 = vmatmul.msk.bf16.vlgmr.msra.gmra.mxu0 %vm751_vm4, %v3227_v58 }
 0x7ef   :  { %3129 = vmatmul.msk.bf16.gmra.mxu0 %vm751_vm4, %v3228_v57 }
 0x80b   :  { %v1476_v56 = vpop.f32.mrf.mxu3 }
 0x80c   :  { %v1520_v23 = vadd.f32 %v1519_v7, %v1476_v56 }
 0x813   :  { %v1478_v54 = vpop.f32.mrf.mxu3 }
 0x814   :  { %v1522_v29 = vadd.f32 %v1521_v55, %v1478_v54 }
 0x81b   :  { %v1481_v49 = vpop.f32.mrf.mxu3 }
 0x81c   :  { %v1578_v53 = vpop.f32.mrf.mxu0  ;;  %v1525_v37 = vadd.f32 %v1524_v51, %v1481_v49  ;;  %v2013_v51 = vld [vmem:[%s4251_s9 + $0x10] sm:$0xff]  ;;  %v2012_v49 = vld [vmem:[%s4251_s9 + $0x8] sm:$0xff] }
 0x81d   :  { %v1588_v25 = vadd.f32 %v1578_v53, %v1520_v23  ;;  %2040 = vmatpush.msra.mxu2 %v2013_v51  ;;  %v2011_v53 = vld [vmem:[%s4251_s9] sm:$0xff]  ;;  %v3149_v51 = vld [vmem:[%s4253_s11 + $0x18] sm:$0xf]  ;;  %s2772_s9 = sshll.u32 %s4258_s16, 4  ;;  %s2773_s9 = int_to_ptr.hbm [resolvable:$true] %s2772_s9 }
 0x81f   :  { %2041 = vmatpush.msra.mxu2 %v2012_v49  ;;  %v3153_v49 = vld [vmem:[%s4253_s11 + $0x20] sm:$0xf] }
 0x821   :  { %2042 = vmatpush.msra.mxu2 %v2011_v53 }
 0x823   :  { %v1483_v9 = vpop.f32.mrf.mxu3 }
 0x824   :  { %v1580_v10 = vpop.f32.mrf.mxu0  ;;  %v1527_v48 = vadd.f32 %v1526_v8, %v1483_v9 }
 0x825   :  { %v1589_v32 = vadd.f32 %v1580_v10, %v1522_v29  ;;  %v3413_v10 = vld [vmem:[%s4245_s3 + $0x9] ss:$0 sm:$0xff] }
 0x828   :  { %v1704_v11 = vpop.f32.mrf.mxu1 }
 0x82b   :  { %v1641_v12 = vpop.f32.mrf.mxu3 }
 0x82c   :  { %v1583_v13 = vpop.f32.mrf.mxu0  ;;  %v1651_v27 = vadd.f32 %v1641_v12, %v1588_v25 }
 0x82d   :  { %v1590_v42 = vadd.f32 %v1583_v13, %v1525_v37 }
 0x82e   :  { %v1714_v30 = vadd.f32 %v1704_v11, %v1651_v27 }
 0x830   :  { %v1706_v16 = vpop.f32.mrf.mxu1 }
 0x833   :  { %v1643_v14 = vpop.f32.mrf.mxu3 }
 0x834   :  { %v1585_v15 = vpop.f32.mrf.mxu0  ;;  %v1652_v34 = vadd.f32 %v1643_v14, %v1589_v32  ;;  %v3414_v14 = vld [vmem:[%s4245_s3 + $0xa] ss:$0 sm:$0xff] }
 0x835   :  { %v1591_v3 = vadd.f32 %v1585_v15, %v1527_v48  ;;  %v3418_v48 = vld [vmem:[%s4245_s3 + $0xe] ss:$0 sm:$0xff] }
 0x836   :  { %v1715_v38 = vadd.f32 %v1706_v16, %v1652_v34  ;;  %v2056_v34 = vld [vmem:[%s4252_s10] sm:$0xf] }
 0x838   :  { %v1709_v19 = vpop.f32.mrf.mxu1 }
 0x83b   :  { %v1646_v17 = vpop.f32.mrf.mxu3 }
 0x83c   :  { %v1767_v18 = vpop.f32.mrf.mxu0  ;;  %v1653_v45 = vadd.f32 %v1646_v17, %v1590_v42 }
 0x83d   :  { %v1777_v33 = vadd.f32 %v1767_v18, %v1714_v30 }
 0x83e   :  { %v1716_v50 = vadd.f32 %v1709_v19, %v1653_v45  ;;  %v2128_v45 = vld [vmem:[%s4255_s13 + $0x8] sm:$0xff] }
 0x840   :  { %v1711_v22 = vpop.f32.mrf.mxu1 }
 0x843   :  { %v1648_v20 = vpop.f32.mrf.mxu3 }
 0x844   :  { %v1769_v21 = vpop.f32.mrf.mxu0  ;;  %v1654_v63 = vadd.f32 %v1648_v20, %v1591_v3 }
 0x845   :  { %v1778_v43 = vadd.f32 %v1769_v21, %v1715_v38  ;;  %v3415_v38 = vld [vmem:[%s4245_s3 + $0xb] ss:$0 sm:$0xff] }
 0x846   :  { %v1717_v62 = vadd.f32 %v1711_v22, %v1654_v63  ;;  %v2152_v63 = vld [vmem:[%s4253_s11] sm:$0xf] }
 0x848   :  { %v1893_v28 = vpop.f32.mrf.mxu1 }
 0x84b   :  { %v1830_v26 = vpop.f32.mrf.mxu3 }
 0x84c   :  { %v1772_v24 = vpop.f32.mrf.mxu0  ;;  %v1840_v35 = vadd.f32 %v1830_v26, %v1777_v33 }
 0x84d   :  { %v1779_v4 = vadd.f32 %v1772_v24, %v1716_v50 }
 0x84e   :  { %v1903_v39 = vadd.f32 %v1893_v28, %v1840_v35  ;;  %v2092_v35 = vld [vmem:[%s4254_s12 + $0x8] sm:$0xf] }
 0x84f   :  { %3135 = vmatpush.msk.msrb.mxu1 %vm2096_vm8, %v2092_v35  ;;  %v2431_v35 = vld [vmem:[%s4256_s14] sm:$0xff] }
 0x850   :  { %v1895_v40 = vpop.f32.mrf.mxu1 }
 0x853   :  { %v1832_v36 = vpop.f32.mrf.mxu3 }
 0x854   :  { %v1774_v31 = vpop.f32.mrf.mxu0  ;;  %v1841_v46 = vadd.f32 %v1832_v36, %v1778_v43  ;;  %v2091_v36 = vld [vmem:[%s4254_s12] sm:$0xff] }
 0x855   :  { %v1780_v59 = vadd.f32 %v1774_v31, %v1717_v62  ;;  %2115 = vmatpush.msrb.mxu1 %v2091_v36  ;;  %v3151_v62 = vld [vmem:[%s4253_s11 + $0x1c] sm:$0xf] }
 0x856   :  { %v1904_v52 = vadd.f32 %v1895_v40, %v1841_v46  ;;  %v2127_v46 = vld [vmem:[%s4255_s13] sm:$0xff]  ;;  %s3461_s13 = smov 12  }
 0x857   :  { %2146 = vmatpush.msra.mxu1 %v2128_v45  ;;  %v3421_v45 = vld [vmem:[%s4245_s3 + $0x11] ss:$0 sm:$0xff] }
 0x858   :  { %v1898_v2 = vpop.f32.mrf.mxu1 }
 0x859   :  { %2147 = vmatpush.msra.mxu1 %v2127_v46  ;;  %v3422_v46 = vld [vmem:[%s4245_s3 + $0x12] ss:$0 sm:$0xff] }
 0x85b   :  { %v1835_v47 = vpop.f32.mrf.mxu3 }
 0x85c   :  { %v1956_v41 = vpop.f32.mrf.mxu0  ;;  %v1842_v0 = vadd.f32 %v1835_v47, %v1779_v4  ;;  %v3417_v47 = vld [vmem:[%s4245_s3 + $0xd] ss:$0 sm:$0xff] }
 0x85d   :  { %v1966_v44 = vadd.f32 %v1956_v41, %v1903_v39  ;;  %v3416_v39 = vld [vmem:[%s4245_s3 + $0xc] ss:$0 sm:$0xff] }
 0x85e   :  { %v1905_v61 = vadd.f32 %v1898_v2, %v1842_v0 }
 0x85f   :  { %1974 = vrot.lane.b32.xlu0 %v1966_v44, %s3460_s4 }
 0x860   :  { %v1900_v7 = vpop.f32.mrf.mxu1 }
 0x863   :  { %v1837_v60 = vpop.f32.mrf.mxu3 }
 0x864   :  { %v1958_v5 = vpop.f32.mrf.mxu0  ;;  %v1843_v57 = vadd.f32 %v1837_v60, %v1780_v59 }
 0x865   :  { %v1967_v1 = vadd.f32 %v1958_v5, %v1904_v52 }
 0x866   :  { %v1906_v56 = vadd.f32 %v1900_v7, %v1843_v57  ;;  %v3147_v57 = vld [vmem:[%s4253_s11 + $0x14] sm:$0xf] }
 0x867   :  { %1976 = vrot.lane.b32.xlu1 %v1967_v1, %s3460_s4  ;;  %v3143_v1 = vld [vmem:[%s4253_s11 + $0xc] sm:$0xf] }
 0x86c   :  { %v1961_v6 = vpop.f32.mrf.mxu0 }
 0x86d   :  { %v1968_v58 = vadd.f32 %v1961_v6, %v1905_v61  ;;  %v3138_v61 = vld [vmem:[%s4253_s11 + $0x4] sm:$0xf] }
 0x86f   :  { %1978 = vrot.lane.b32.xlu2 %v1968_v58, %s3460_s4  ;;  %v3141_v58 = vld [vmem:[%s4253_s11 + $0x8] sm:$0xf] }
 0x874   :  { %v1963_v55 = vpop.f32.mrf.mxu0 }
 0x875   :  { %v1969_v54 = vadd.f32 %v1963_v55, %v1906_v56  ;;  %v3145_v55 = vld [vmem:[%s4253_s11 + $0x10] sm:$0xf] }
 0x877   :  { %1980 = vrot.lane.b32.xlu0 %v1969_v54, %s3460_s4 }
 0x8c9   :  { %v1979_v8 = vpop.permute.xlu2 %1978 }
 0x8ca   :  { %1989 = vst.msk [vmem:[#allocation2 + $0x10] sm:$0xff] %vm1986_vm6, %v1979_v8 }
 0x8d1   :  { %v1975_v9 = vpop.permute.xlu0 %1974  ;;  %v1993_v19 = vld [vmem:[#allocation2 + $0x10] sm:$0xff] }
 0x8d2   :  { %1987 = vst.msk [vmem:[#allocation2] sm:$0xff] %vm1986_vm6, %v1975_v9  ;;  %v1999_v22 = vmul.f32 %v3413_v10, %v1993_v19 }
 0x8d4   :  { %v2005_v24 = vadd.f32 %v3414_v14, %v1999_v22 }
 0x8d6   :  { %v2009_v25 = vmax.f32 %v2005_v24, 0.0 }
 0x8d9   :  { %v1977_v11 = vpop.permute.xlu1 %1976  ;;  %v1991_v12 = vld [vmem:[#allocation2] sm:$0xff] }
 0x8da   :  { %1988 = vst.msk [vmem:[#allocation2 + $0x8] sm:$0xff] %vm1986_vm6, %v1977_v11  ;;  %v1997_v13 = vmul.f32 %v3413_v10, %v1991_v12 }
 0x8dc   :  { %v2003_v15 = vadd.f32 %v3414_v14, %v1997_v13 }
 0x8de   :  { %v2007_v16 = vmax.f32 %v2003_v15, 0.0 }
 0x8e0   :  { %3130 = vmatmul.msk.f32.vlgmr.msra.gmra.mxu2 %vm2014_vm7, %v2007_v16 }
 0x8e1   :  { %v1992_v17 = vld [vmem:[#allocation2 + $0x8] sm:$0xff] }
 0x8e2   :  { %v1998_v18 = vmul.f32 %v3413_v10, %v1992_v17 }
 0x8e4   :  { %v2004_v20 = vadd.f32 %v3414_v14, %v1998_v18 }
 0x8e6   :  { %v2008_v21 = vmax.f32 %v2004_v20, 0.0 }
 0x8e8   :  { %3131 = vmatmul.msk.f32.gmra.mxu2 %vm2014_vm7, %v2008_v21 }
 0x8e9   :  { %v1981_v23 = vpop.permute.xlu0 %1980 }
 0x8ea   :  { %1990 = vst.msk [vmem:[#allocation2 + $0x18] sm:$0xff] %vm1986_vm6, %v1981_v23 }
 0x8f0   :  { %3132 = vmatmul.msk.f32.gmra.mxu2 %vm2014_vm7, %v2009_v25 }
 0x8f1   :  { %v1994_v26 = vld [vmem:[#allocation2 + $0x18] sm:$0xff] }
 0x8f2   :  { %v2000_v27 = vmul.f32 %v3413_v10, %v1994_v26 }
 0x8f4   :  { %v2006_v28 = vadd.f32 %v3414_v14, %v2000_v27 }
 0x8f6   :  { %v2010_v29 = vmax.f32 %v2006_v28, 0.0 }
 0x8f8   :  { %3133 = vmatmul.msk.f32.gmra.mxu2 %vm2014_vm7, %v2010_v29 }
 0x963   :  { %v2044_v30 = vpop.f32.mrf.mxu2 }
 0x96b   :  { %v2047_v31 = vpop.f32.mrf.mxu2 }
 0x973   :  { %v2050_v32 = vpop.f32.mrf.mxu2 }
 0x97b   :  { %v2053_v33 = vpop.f32.mrf.mxu2 }
 0x97c   :  { %2072 = vmatpush.msra.mxu3 %v2053_v33  ;;  %v2433_v33 = vld [vmem:[%s4256_s14 + $0x10] sm:$0xf] }
 0x97e   :  { %2073 = vmatpush.msra.mxu3 %v2050_v32 }
 0x980   :  { %2074 = vmatpush.msra.mxu3 %v2047_v31 }
 0x982   :  { %2075 = vmatpush.msra.mxu3 %v2044_v30 }
 0x983   :  { %3134 = vmatmul.msk.bf16.vlgmr.msra.gmra.mxu3 %vm751_vm4, %v2056_v34  ;;  %v2432_v34 = vld [vmem:[%s4256_s14 + $0x8] sm:$0xff] }
 0xa06   :  { %v2077_v37 = vpop.f32.mrf.mxu3 }
 0xa07   :  { %2082 = vst.msk [vmem:[#allocation3] sm:$0xff] %vm2081_vm9, %v2077_v37  ;;  %v3419_v37 = vld [vmem:[%s4245_s3 + $0xf] ss:$0 sm:$0xff] }
 0xa0e   :  { %v2079_v40 = vpop.f32.mrf.mxu3  ;;  %v2083_v41 = vld [vmem:[#allocation3] sm:$0xff] }
 0xa0f   :  { %v2086_v42 = vmul.f32 %v3415_v38, %v2083_v41  ;;  %v3420_v38 = vld [vmem:[%s4245_s3 + $0x10] ss:$0 sm:$0xff] }
 0xa11   :  { %v2089_v43 = vadd.f32 %v3416_v39, %v2086_v42 }
 0xa13   :  { %v2090_v44 = vmax.f32 %v2089_v43, 0.0  ;;  %v2469_v43 = vld [vmem:[%s4257_s15 + $0x8] sm:$0xff] }
 0xa15   :  { %3136 = vmatmul.msk.f32.vlgmr.msrb.gmra.mxu1 %vm2081_vm9, %v2090_v44  ;;  %v2468_v44 = vld [vmem:[%s4257_s15] sm:$0xff] }
 0xa92   :  { %v2117_v50 = vpop.f32.mrf.mxu1 }
 0xa93   :  { %v2122_v52 = vmul.f32 %v3417_v47, %v2117_v50 }
 0xa95   :  { %v2125_v5 = vadd.f32 %v3418_v48, %v2122_v52 }
 0xa97   :  { %v2126_v3 = vmax.f32 %v2125_v5, 0.0 }
 0xa99   :  { %3137 = vmatmul.msk.f32.vlgmr.msra.gmra.mxu1 %vm674_vm3, %v2126_v3  ;;  %v2493_v3 = vld [vmem:[%s4253_s11] sm:$0xf] }
 0xb16   :  { %v2149_v4 = vpop.f32.mrf.mxu1 }
 0xb17   :  { %2239 = vrot.lane.b32.xlu2 %v2149_v4, %s3454_s23  ;;  %2156 = vrot.lane.b32.xlu1 %v2149_v4, %s3453_s22 }
 0xb18   :  { %2269 = vrot.lane.b32.xlu0 %v2149_v4, %s3455_s24  ;;  %2201 = vmatpush.msrb.mxu1 %v2149_v4 }
 0xb19   :  { %3140 = vmatmul.msk.bf16.vlgmr.msrb.gmra.mxu1 %vm589_vm2, %v2152_v63 }
 0xb1f   :  { %2359 = vrot.lane.b32.xlu2 %v2149_v4, %s3458_s26  ;;  %2209 = vrot.lane.b32.xlu1 %v2149_v4, %s3452_s21 }
 0xb20   :  { %2299 = vrot.lane.b32.xlu0 %v2149_v4, %s3451_s6 }
 0xb27   :  { %2329 = vrot.lane.b32.xlu2 %v2149_v4, %s3456_s25  ;;  %2389 = vrot.lane.b32.xlu1 %v2149_v4, %s3457_s2  ;;  %v3161_v4 = vld [vmem:[%s4253_s11 + $0x8] sm:$0xf] }
 0xb71   :  { %v2240_v2 = vpop.permute.xlu2 %2239 }
 0xb72   :  { %2260 = vmatpush.msrb.mxu2 %v2240_v2  ;;  %v3167_v2 = vld [vmem:[%s4253_s11 + $0x14] sm:$0xf] }
 0xb73   :  { %3144 = vmatmul.msk.bf16.vlgmr.msrb.gmra.mxu2 %vm589_vm2, %v3143_v1 }
 0xb79   :  { %v2360_v0 = vpop.permute.xlu2 %2359 }
 0xb7a   :  { %2380 = vmatpush.msra.mxu2 %v2360_v0  ;;  %v3163_v0 = vld [vmem:[%s4253_s11 + $0xc] sm:$0xf] }
 0xb81   :  { %v2330_v7 = vpop.permute.xlu2 %2329 }
 0xb83   :  { %3152 = vmatmul.msk.bf16.vlgmr.msra.gmra.mxu2 %vm589_vm2, %v3151_v62 }
 0xb89   :  { %v2157_v60 = vpop.permute.xlu1 %2156 }
 0xb8a   :  { %2177 = vmatpush.msrb.mxu3 %v2157_v60  ;;  %v2270_v6 = vpop.permute.xlu0 %2269 }
 0xb8b   :  { %3139 = vmatmul.msk.bf16.vlgmr.msrb.gmra.mxu3 %vm589_vm2, %v3138_v61  ;;  %v3158_v61 = vld [vmem:[%s4253_s11 + $0x4] sm:$0xf] }
 0xb8c   :  { %2290 = vmatpush.msra.mxu3 %v2270_v6  ;;  %v3169_v6 = vld [vmem:[%s4253_s11 + $0x18] sm:$0xf] }
 0xb91   :  { %v2210_v59 = vpop.permute.xlu1 %2209 }
 0xb92   :  { %2230 = vmatpush.msrb.mxu0 %v2210_v59  ;;  %v2300_v56 = vpop.permute.xlu0 %2299 }
 0xb93   :  { %2320 = vmatpush.msra.mxu1 %v2300_v56  ;;  %3142 = vmatmul.msk.bf16.vlgmr.msrb.gmra.mxu0 %vm589_vm2, %v3141_v58  ;;  %v3171_v56 = vld [vmem:[%s4253_s11 + $0x1c] sm:$0xf] }
 0xb94   :  { %2350 = vmatpush.msra.mxu0 %v2330_v7  ;;  %3148 = vmatmul.msk.bf16.vlgmr.msra.gmra.mxu1 %vm589_vm2, %v3147_v57  ;;  %v3165_v7 = vld [vmem:[%s4253_s11 + $0x10] sm:$0xf] }
 0xb95   :  { %3155 = vmatpush.msk.msrb.mxu1 %vm2096_vm8, %v2433_v33  ;;  %v3424_v33 = vld [vmem:[%s4245_s3 + $0x14] ss:$0 sm:$0xff] }
 0xb96   :  { %v2203_v53 = vpop.f32.mrf.mxu1 }
 0xb97   :  { %2455 = vmatpush.msrb.mxu1 %v2432_v34 }
 0xb99   :  { %v2390_v54 = vpop.permute.xlu1 %2389  ;;  %2456 = vmatpush.msrb.mxu1 %v2431_v35 }
 0xb9a   :  { %2410 = vmatpush.msrb.mxu3 %v2390_v54  ;;  %v3173_v54 = vld [vmem:[%s4253_s11 + $0x20] sm:$0xf]  ;;  %s3462_s11 = smov 20  }
 0xb9b   :  { %3146 = vmatmul.msk.bf16.vlgmr.msra.gmra.mxu3 %vm589_vm2, %v3145_v55  ;;  %2487 = vmatpush.msra.mxu1 %v2469_v43 }
 0xb9d   :  { %2488 = vmatpush.msra.mxu1 %v2468_v44 }
 0xb9e   :  { %v2205_v9 = vpop.f32.mrf.mxu1 }
 0xba3   :  { %3150 = vmatmul.msk.bf16.vlgmr.msra.gmra.mxu0 %vm589_vm2, %v3149_v51 }
 0xbab   :  { %3154 = vmatmul.msk.bf16.vlgmr.msrb.gmra.mxu3 %vm589_vm2, %v3153_v49 }
 0xbf6   :  { %v2262_v8 = vpop.f32.mrf.mxu2 }
 0xbfe   :  { %v2264_v10 = vpop.f32.mrf.mxu2 }
 0xc06   :  { %v2382_v11 = vpop.f32.mrf.mxu2 }
 0xc0e   :  { %v2179_v12 = vpop.f32.mrf.mxu3  ;;  %v2384_v13 = vpop.f32.mrf.mxu2 }
 0xc0f   :  { %v2204_v17 = vadd.f32 %v2203_v53, %v2179_v12 }
 0xc10   :  { %v2232_v14 = vpop.f32.mrf.mxu0 }
 0xc11   :  { %v2322_v15 = vpop.f32.mrf.mxu1  ;;  %v2236_v20 = vadd.f32 %v2232_v14, %v2204_v17 }
 0xc13   :  { %v2266_v22 = vadd.f32 %v2262_v8, %v2236_v20 }
 0xc16   :  { %v2181_v16 = vpop.f32.mrf.mxu3 }
 0xc18   :  { %v2234_v18 = vpop.f32.mrf.mxu0 }
 0xc19   :  { %v2324_v19 = vpop.f32.mrf.mxu1 }
 0xc1e   :  { %v2292_v21 = vpop.f32.mrf.mxu3 }
 0xc1f   :  { %v2296_v23 = vadd.f32 %v2292_v21, %v2266_v22 }
 0xc20   :  { %v2352_v24 = vpop.f32.mrf.mxu0 }
 0xc21   :  { %v2326_v25 = vadd.f32 %v2322_v15, %v2296_v23 }
 0xc23   :  { %v2356_v27 = vadd.f32 %v2352_v24, %v2326_v25 }
 0xc25   :  { %v2386_v29 = vadd.f32 %v2382_v11, %v2356_v27 }
 0xc26   :  { %v2294_v26 = vpop.f32.mrf.mxu3 }
 0xc28   :  { %v2354_v28 = vpop.f32.mrf.mxu0 }
 0xc2e   :  { %v2412_v30 = vpop.f32.mrf.mxu3 }
 0xc2f   :  { %v2416_v31 = vadd.f32 %v2412_v30, %v2386_v29 }
 0xc31   :  { %2418 = vrot.lane.b32.xlu0 %v2416_v31, %s3461_s13 }
 0xc36   :  { %v2414_v32 = vpop.f32.mrf.mxu3 }
 0xc37   :  { %v3423_v32 = vld [vmem:[%s4245_s3 + $0x13] ss:$0 sm:$0xff] }
 0xca3   :  { %v2419_v36 = vpop.permute.xlu0 %2418 }
 0xca4   :  { %2422 = vst.msk [vmem:[#allocation3] sm:$0xff] %vm2421_vm10, %v2419_v36 }
 0xcab   :  { %v2423_v39 = vld [vmem:[#allocation3] sm:$0xff] }
 0xcac   :  { %v2426_v40 = vmul.f32 %v3419_v37, %v2423_v39 }
 0xcae   :  { %v2429_v41 = vadd.f32 %v3420_v38, %v2426_v40 }
 0xcb0   :  { %v2430_v42 = vmax.f32 %v2429_v41, 0.0 }
 0xcb2   :  { %3156 = vmatmul.msk.f32.vlgmr.msrb.gmra.mxu1 %vm2434_vm11, %v2430_v42 }
 0xd2f   :  { %v2458_v47 = vpop.f32.mrf.mxu1 }
 0xd30   :  { %v2463_v48 = vmul.f32 %v3421_v45, %v2458_v47 }
 0xd32   :  { %v2466_v50 = vadd.f32 %v3422_v46, %v2463_v48 }
 0xd34   :  { %v2467_v52 = vmax.f32 %v2466_v50, 0.0 }
 0xd36   :  { %3157 = vmatmul.msk.f32.vlgmr.msra.gmra.mxu1 %vm674_vm3, %v2467_v52 }
 0xdb3   :  { %v2490_v5 = vpop.f32.mrf.mxu1 }
 0xdb4   :  { %2577 = vrot.lane.b32.xlu0 %v2490_v5, %s3454_s23  ;;  %2548 = vrot.lane.b32.xlu2 %v2490_v5, %s3452_s21 }
 0xdb5   :  { %2496 = vrot.lane.b32.xlu1 %v2490_v5, %s3453_s22  ;;  %2541 = vmatpush.msrb.mxu2 %v2490_v5 }
 0xdb6   :  { %3160 = vmatmul.msk.bf16.vlgmr.msrb.gmra.mxu2 %vm589_vm2, %v2493_v3 }
 0xdbc   :  { %2664 = vrot.lane.b32.xlu0 %v2490_v5, %s3456_s25  ;;  %2635 = vrot.lane.b32.xlu2 %v2490_v5, %s3451_s6 }
 0xdbd   :  { %2606 = vrot.lane.b32.xlu1 %v2490_v5, %s3455_s24 }
 0xdc4   :  { %2722 = vrot.lane.b32.xlu2 %v2490_v5, %s3457_s2 }
 0xdc5   :  { %2693 = vrot.lane.b32.xlu1 %v2490_v5, %s3458_s26 }
 0xe0e   :  { %v2549_v1 = vpop.permute.xlu2 %2548 }
 0xe0f   :  { %2569 = vmatpush.msra.mxu3 %v2549_v1 }
 0xe10   :  { %3162 = vmatmul.msk.bf16.vlgmr.msra.gmra.mxu3 %vm589_vm2, %v3161_v4 }
 0xe16   :  { %v2636_v63 = vpop.permute.xlu2 %2635 }
 0xe17   :  { %2656 = vmatpush.msra.mxu2 %v2636_v63 }
 0xe18   :  { %3168 = vmatmul.msk.bf16.vlgmr.msra.gmra.mxu2 %vm589_vm2, %v3167_v2 }
 0xe1e   :  { %v2723_v57 = vpop.permute.xlu2 %2722 }
 0xe26   :  { %v2578_v62 = vpop.permute.xlu0 %2577 }
 0xe27   :  { %v2497_v60 = vpop.permute.xlu1 %2496  ;;  %2598 = vmatpush.msrb.mxu1 %v2578_v62 }
 0xe28   :  { %2517 = vmatpush.msrb.mxu0 %v2497_v60  ;;  %3164 = vmatmul.msk.bf16.vlgmr.msrb.gmra.mxu1 %vm589_vm2, %v3163_v0 }
 0xe29   :  { %3159 = vmatmul.msk.bf16.vlgmr.msrb.gmra.mxu0 %vm589_vm2, %v3158_v61 }
 0xe2e   :  { %v2665_v59 = vpop.permute.xlu0 %2664 }
 0xe2f   :  { %v2607_v58 = vpop.permute.xlu1 %2606  ;;  %2685 = vmatpush.msrb.mxu3 %v2665_v59 }
 0xe30   :  { %2627 = vmatpush.msra.mxu0 %v2607_v58  ;;  %3170 = vmatmul.msk.bf16.vlgmr.msrb.gmra.mxu3 %vm589_vm2, %v3169_v6 }
 0xe32   :  { %2743 = vmatpush.msrb.mxu0 %v2723_v57 }
 0xe37   :  { %v2694_v55 = vpop.permute.xlu1 %2693 }
 0xe38   :  { %2714 = vmatpush.msra.mxu1 %v2694_v55 }
 0xe39   :  { %3166 = vmatmul.msk.bf16.vlgmr.msra.gmra.mxu0 %vm589_vm2, %v3165_v7  ;;  %3172 = vmatmul.msk.bf16.vlgmr.msra.gmra.mxu1 %vm589_vm2, %v3171_v56  ;;  %v2543_v51 = vpop.f32.mrf.mxu2 }
 0xe41   :  { %v2545_v49 = vpop.f32.mrf.mxu2 }
 0xe49   :  { %3174 = vmatmul.msk.bf16.vlgmr.msrb.gmra.mxu0 %vm589_vm2, %v3173_v54 }
 0xe93   :  { %v2571_v53 = vpop.f32.mrf.mxu3 }
 0xe9b   :  { %v2573_v8 = vpop.f32.mrf.mxu3  ;;  %v2658_v9 = vpop.f32.mrf.mxu2 }
 0xea3   :  { %v2660_v10 = vpop.f32.mrf.mxu2 }
 0xea5   :  { %v2600_v11 = vpop.f32.mrf.mxu1 }
 0xea6   :  { %v2519_v12 = vpop.f32.mrf.mxu0 }
 0xea7   :  { %v2544_v15 = vadd.f32 %v2543_v51, %v2519_v12 }
 0xea9   :  { %v2575_v16 = vadd.f32 %v2571_v53, %v2544_v15 }
 0xeab   :  { %v2604_v20 = vadd.f32 %v2600_v11, %v2575_v16 }
 0xead   :  { %v2602_v13 = vpop.f32.mrf.mxu1 }
 0xeae   :  { %v2521_v14 = vpop.f32.mrf.mxu0 }
 0xeb3   :  { %v2687_v17 = vpop.f32.mrf.mxu3 }
 0xeb6   :  { %v2629_v18 = vpop.f32.mrf.mxu0  ;;  %v2716_v19 = vpop.f32.mrf.mxu1 }
 0xeb7   :  { %v2633_v21 = vadd.f32 %v2629_v18, %v2604_v20 }
 0xeb9   :  { %v2662_v23 = vadd.f32 %v2658_v9, %v2633_v21 }
 0xebb   :  { %v2689_v22 = vpop.f32.mrf.mxu3  ;;  %v2691_v26 = vadd.f32 %v2687_v17, %v2662_v23 }
 0xebd   :  { %v2720_v27 = vadd.f32 %v2716_v19, %v2691_v26 }
 0xebe   :  { %v2631_v24 = vpop.f32.mrf.mxu0  ;;  %v2718_v25 = vpop.f32.mrf.mxu1 }
 0xec6   :  { %v2745_v28 = vpop.f32.mrf.mxu0 }
 0xec7   :  { %v2749_v29 = vadd.f32 %v2745_v28, %v2720_v27 }
 0xec9   :  { %2751 = vrot.lane.b32.xlu0 %v2749_v29, %s3462_s11 }
 0xece   :  { %v2747_v30 = vpop.f32.mrf.mxu0 }
 0xf3b   :  { %v2752_v31 = vpop.permute.xlu0 %2751 }
 0xf3c   :  { %2755 = vst.msk [vmem:[#allocation3] sm:$0xff] %vm2754_vm12, %v2752_v31 }
 0xf43   :  { %v2756_v34 = vld [vmem:[#allocation3] sm:$0xff] }
 0xf44   :  { %v2759_v35 = vmul.f32 %v3423_v32, %v2756_v34 }
 0xf46   :  { %v2762_v36 = vadd.f32 %v3424_v33, %v2759_v35 }
 0xf48   :  { %2764 = vst.msk [vmem:[#allocation4] sm:$0xff] %vm2763_vm13, %v2762_v36 }
 0xf49   :  { %2775 = dma.vmem_to_hbm [thread:$0]  %s2771_s20, 128, %s2773_s9, [#allocation5]  }
 0xf4a   :  { %3449 = dma.done.wait [#allocation5], 128  }
 0xf4b   :  { %3450 = vsyncadd [#allocation5], 4294967168 }
 0xf4c   :  { %2780 = vsyncpa [#allocation5], 1 }

</bundles_post_ra>
